<compile_context>
chip_gen: v7x
topology: tpu7x:2x2x1
jax: 0.10.0
libtpu: 0.0.40
codegen_flags: <defaults>
</compile_context>

<pallas_src>
import jax
import jax.numpy as jnp
from jax import lax
from jax.experimental import pallas as pl
from jax.experimental.pallas import tpu as pltpu


_LN_EPS = 1e-5  # torch.nn.LayerNorm default


def mnist_mha_kernel(
    x_ref,      # (TB, K_pad)        flattened input rows (matmul dtype)
    w_pre_ref,  # (K_pad, E)         fused embedding∘V∘out_proj weight, (in, out)
    b_pre_ref,  # (1, E)    f32      fused bias
    w1_ref,     # (E, H)             classifier[0] weight (LN affine folded)
    b1_ref,     # (1, H)    f32
    w2_ref,     # (H, C_pad)         classifier[2] weight, class-padded
    b2_ref,     # (1, C_pad) f32
    o_ref,      # (TB, C_pad)        matmul dtype (lane-dense stores)
):
    # embedding + (seq_len==1) multi-head attention fused into one matmul.
    # num_heads is irrelevant: with one key the per-head softmax is exactly 1,
    # so attn_output == out_proj(value_proj(embedding(x))).
    attn = jnp.dot(x_ref[...], w_pre_ref[...],
                   preferred_element_type=jnp.float32) + b_pre_ref[...]

    # LayerNorm over embed_dim in f32 (affine folded into w1/b1).
    mean = jnp.mean(attn, axis=-1, keepdims=True)
    centered = attn - mean
    var = jnp.mean(centered * centered, axis=-1, keepdims=True)
    normed = centered * lax.rsqrt(var + _LN_EPS)

    # classifier: Linear(E, H) -> ReLU -> Linear(H, C_pad).
    h1 = jnp.dot(normed.astype(w1_ref.dtype), w1_ref[...],
                 preferred_element_type=jnp.float32) + b1_ref[...]
    h1 = jnp.maximum(h1, 0.0)
    out = jnp.dot(h1.astype(w2_ref.dtype), w2_ref[...],
                  preferred_element_type=jnp.float32) + b2_ref[...]
    o_ref[...] = out.astype(o_ref.dtype)


def _round_up(n, m):
    return ((n + m - 1) // m) * m


def fold_params(params, *, matmul_dtype=jnp.bfloat16):
    """One-time host-side weight folding (call ONCE, outside the hot path).

    Returns pre-transposed (in, out) weights in `matmul_dtype`, f32 biases,
    lane-padded layouts, plus the true num_classes for slicing.
    """
    hp = lax.Precision.HIGHEST
    e = params["w_emb"].shape[0]              # embed_dim
    in_features = params["w_emb"].shape[1]    # 784
    hidden = params["w1"].shape[0]            # 128
    num_classes = params["w2"].shape[0]       # 10

    # attn = x @ (W_out @ W_v @ W_emb)^T + b_emb @ (W_out @ W_v)^T
    #        + b_v @ W_out^T + b_out
    w_v = params["w_in"][2 * e:, :]           # value rows of in_proj (E, E)
    b_v = params["b_in"][:, 2 * e:]           # (1, E)
    w_ov = jnp.dot(params["w_out"], w_v, precision=hp)       # (E, E)
    w_pre = jnp.dot(w_ov, params["w_emb"], precision=hp)     # (E, 784)
    b_pre = (jnp.dot(params["b_emb"], w_ov.T, precision=hp)
             + jnp.dot(b_v, params["w_out"].T, precision=hp)
             + params["b_out"])                               # (1, E)

    # LayerNorm affine folded into classifier[0].
    w1f = params["w1"] * params["ln_g"]                       # (H, E)
    b1f = params["b1"] + jnp.dot(params["ln_b"], params["w1"].T, precision=hp)

    k_pad = _round_up(in_features, 128)            # 784 -> 896 lane-aligned K
    c_pad = max(128, _round_up(num_classes, 128))  # lane-dense output stores

    w_pre_t = (jnp.zeros((k_pad, e), matmul_dtype)
               .at[:in_features, :].set(w_pre.T.astype(matmul_dtype)))
    w1_t = w1f.T.astype(matmul_dtype)                          # (E, H)
    w2_t = (jnp.zeros((hidden, c_pad), matmul_dtype)
            .at[:, :num_classes].set(params["w2"].T.astype(matmul_dtype)))
    b2_p = (jnp.zeros((1, c_pad), jnp.float32)
            .at[:, :num_classes].set(params["b2"]))

    return {
        "w_pre": w_pre_t,
        "b_pre": b_pre.astype(jnp.float32),
        "w1": w1_t,
        "b1": b1f.astype(jnp.float32),
        "w2": w2_t,
        "b2": b2_p,
        "num_classes": num_classes,
    }


def mnist_mha_forward(x_nchw, folded, *, block_b=1024):
    """MNISTWithMHA forward via one fused Pallas kernel.

    folded:  result of fold_params() (folding hoisted out of the call path).
    block_b: batch tile in rows. 1024 keeps per-step overhead negligible and
             the working set (~10 MB at bf16) well inside VMEM on v5e/v6e/v7x.
    """
    w_pre, b_pre = folded["w_pre"], folded["b_pre"]
    w1, b1 = folded["w1"], folded["b1"]
    w2, b2 = folded["w2"], folded["b2"]
    num_classes = folded["num_classes"]

    dtype = w_pre.dtype
    k_pad, e = w_pre.shape
    hidden, c_pad = w2.shape
    mm_bytes = jnp.dtype(dtype).itemsize
    row_align = 8 * (4 // mm_bytes)           # sublane pack: 8 (f32) / 16 (bf16)

    b = x_nchw.shape[0]
    # Cast BEFORE padding; single jnp.pad in the target dtype (no f32 copies).
    x2d = x_nchw.reshape(b, -1).astype(dtype)
    in_features = x2d.shape[1]
    b_pad = _round_up(b, row_align)           # pad batch only to sublane pack
    x_in = jnp.pad(x2d, ((0, b_pad - b), (0, k_pad - in_features)))

    # Batch tile: as large as block_b, but keep >= 2 "parallel" grid steps when
    # the batch is big enough so both v7x TensorCores get work.
    tb = min(_round_up(block_b, row_align), b_pad)
    if b_pad >= 1024 and pl.cdiv(b_pad, tb) < 2:
        tb = _round_up(pl.cdiv(b_pad, 2), row_align)
    grid_n = pl.cdiv(b_pad, tb)   # partial final block OK: dead rows sliced off

    const2 = lambda i: (0, 0)

    def build_in_specs(single_buffer_weights):
        if single_buffer_weights:
            # Constant-index_map operands are resident; single-buffer them to
            # save VMEM and buffer-rotation bookkeeping.
            wspec = lambda shape: pl.BlockSpec(shape, const2,
                                               pipeline_mode=pl.Buffered(1))
        else:
            wspec = lambda shape: pl.BlockSpec(shape, const2)
        return [
            pl.BlockSpec((tb, k_pad), lambda i: (i, 0)),   # x: batch-streamed
            wspec((k_pad, e)),
            wspec((1, e)),
            wspec((e, hidden)),
            wspec((1, hidden)),
            wspec((hidden, c_pad)),
            wspec((1, c_pad)),
        ]

    out_spec = pl.BlockSpec((tb, c_pad), lambda i: (i, 0))

    weight_bytes = (k_pad * e + e * hidden + hidden * c_pad) * mm_bytes
    bias_bytes = (e + hidden + c_pad) * 4
    io_tile_bytes = tb * (k_pad + c_pad) * mm_bytes
    vmem_limit = int(min(
        2 * (weight_bytes + bias_bytes + io_tile_bytes) + (16 << 20),
        48 << 20))  # stay below v7x's 64 MiB physical VMEM

    rows = grid_n * tb
    flops = 2 * rows * (k_pad * e + e * hidden + hidden * c_pad)
    bytes_accessed = (rows * (k_pad + c_pad) * mm_bytes
                      + weight_bytes + bias_bytes)

    def run(single_buffer_weights):
        return pl.pallas_call(
            mnist_mha_kernel,
            out_shape=jax.ShapeDtypeStruct((b_pad, c_pad), dtype),
            grid=(grid_n,),
            in_specs=build_in_specs(single_buffer_weights),
            out_specs=out_spec,
            compiler_params=pltpu.CompilerParams(
                dimension_semantics=("parallel",),
                vmem_limit_bytes=vmem_limit),
            cost_estimate=pl.CostEstimate(
                flops=flops,
                transcendentals=rows,
                bytes_accessed=bytes_accessed),
        )(x_in, w_pre, b_pre, w1, b1, w2, b2)

    try:
        out_padded = run(True)
    except Exception:
        # Older jax without pipeline_mode / Buffered(1) support on TPU specs:
        # fall back to default double-buffered weight operands.
        out_padded = run(False)

    return out_padded[:b, :num_classes].astype(jnp.float32)


def reference_forward(x_nchw, params):
    """Pure-JAX reference mirroring the PyTorch forward (unfused, f32)."""
    b = x_nchw.shape[0]
    e = params["w_emb"].shape[0]
    hp = lax.Precision.HIGHEST
    x = x_nchw.reshape(b, -1).astype(jnp.float32)
    h = jnp.dot(x, params["w_emb"].T, precision=hp) + params["b_emb"]
    # seq_len == 1 attention collapses exactly to out_proj(value_proj(h)).
    w_v = params["w_in"][2 * e:, :]
    b_v = params["b_in"][:, 2 * e:]
    v = jnp.dot(h, w_v.T, precision=hp) + b_v
    attn = jnp.dot(v, params["w_out"].T, precision=hp) + params["b_out"]
    mean = jnp.mean(attn, axis=-1, keepdims=True)
    var = jnp.mean((attn - mean) ** 2, axis=-1, keepdims=True)
    normed = (attn - mean) / jnp.sqrt(var + _LN_EPS)
    normed = normed * params["ln_g"] + params["ln_b"]
    h1 = jnp.maximum(jnp.dot(normed, params["w1"].T, precision=hp)
                     + params["b1"], 0.0)
    return jnp.dot(h1, params["w2"].T, precision=hp) + params["b2"]


def init_params(key, in_features=28 * 28, embed_dim=128, hidden=128,
                num_classes=10):
    ks = jax.random.split(key, 8)
    s = 0.02
    return {
        "w_emb": jax.random.normal(ks[0], (embed_dim, in_features), jnp.float32) * s,
        "b_emb": jax.random.normal(ks[1], (1, embed_dim), jnp.float32) * s,
        "w_in":  jax.random.normal(ks[2], (3 * embed_dim, embed_dim), jnp.float32) * s,
        "b_in":  jnp.zeros((1, 3 * embed_dim), jnp.float32),
        "w_out": jax.random.normal(ks[3], (embed_dim, embed_dim), jnp.float32) * s,
        "b_out": jnp.zeros((1, embed_dim), jnp.float32),
        "ln_g":  jnp.ones((1, embed_dim), jnp.float32),
        "ln_b":  jnp.zeros((1, embed_dim), jnp.float32),
        "w1":    jax.random.normal(ks[4], (hidden, embed_dim), jnp.float32) * s,
        "b1":    jax.random.normal(ks[5], (1, hidden), jnp.float32) * s,
        "w2":    jax.random.normal(ks[6], (num_classes, hidden), jnp.float32) * s,
        "b2":    jax.random.normal(ks[7], (1, num_classes), jnp.float32) * s,
    }


if __name__ == "__main__":
    key = jax.random.PRNGKey(0)
    k_x, k_p = jax.random.split(key)

    # Small shapes consistent with the module: batch=2, MNIST image (1,28,28),
    # embed_dim=128 (multiple of num_heads=8), hidden=128, num_classes=10.
    B = 2
    x = jax.random.normal(k_x, (B, 1, 28, 28), jnp.float32)
    params = init_params(k_p, embed_dim=128, hidden=128, num_classes=10)

    ref = reference_forward(x, params)

    # Weight folding hoisted out of the per-call path (computed once).
    folded_bf16 = fold_params(params, matmul_dtype=jnp.bfloat16)  # default path
    folded_f32 = fold_params(params, matmul_dtype=jnp.float32)

    # bf16 MXU inputs & bf16 writeback (default on all generations);
    # accumulation / LayerNorm / ReLU stay in f32.
    out_bf16 = jax.block_until_ready(mnist_mha_forward(x, folded_bf16))
    assert out_bf16.shape == (B, 10)
    assert jnp.allclose(out_bf16, ref, rtol=5e-2, atol=2e-2), "bf16 path mismatch"

    # f32 path (exact up to fp reassociation from the weight folds).
    out_f32 = jax.block_until_ready(mnist_mha_forward(x, folded_f32))
    assert out_f32.shape == (B, 10)
    assert jnp.allclose(out_f32, ref, rtol=2e-2, atol=5e-3), "f32 path mismatch"

    print("KERNEL_OK")
</pallas_src>

<mosaic_0001>
module attributes {stable_mosaic.version = 11 : i64} {
  func.func @mnist_mha_kernel(%arg0: i32, %arg1: memref<16x896xbf16, #tpu.memory_space<vmem>>, %arg2: memref<896x128xbf16, #tpu.memory_space<vmem>>, %arg3: memref<1x128xf32, #tpu.memory_space<vmem>>, %arg4: memref<128x128xbf16, #tpu.memory_space<vmem>>, %arg5: memref<1x128xf32, #tpu.memory_space<vmem>>, %arg6: memref<128x128xbf16, #tpu.memory_space<vmem>>, %arg7: memref<1x128xf32, #tpu.memory_space<vmem>>, %arg8: memref<16x128xbf16, #tpu.memory_space<vmem>>) attributes {dimension_semantics = [#tpu.dimension_semantics<parallel>], iteration_bounds = array<i64: 1>, scalar_prefetch = 0 : i64, scratch_operands = 0 : i64, tpu.core_type = #tpu.core_type<tc>, window_params = [{transform_indices = @transform_0, window_bounds = array<i64: 16, 896>}, {pipeline_mode = #tpu.pipeline_mode<synchronous>, transform_indices = @transform_1, window_bounds = array<i64: 896, 128>}, {pipeline_mode = #tpu.pipeline_mode<synchronous>, transform_indices = @transform_2, window_bounds = array<i64: 1, 128>}, {pipeline_mode = #tpu.pipeline_mode<synchronous>, transform_indices = @transform_3, window_bounds = array<i64: 128, 128>}, {pipeline_mode = #tpu.pipeline_mode<synchronous>, transform_indices = @transform_4, window_bounds = array<i64: 1, 128>}, {pipeline_mode = #tpu.pipeline_mode<synchronous>, transform_indices = @transform_5, window_bounds = array<i64: 128, 128>}, {pipeline_mode = #tpu.pipeline_mode<synchronous>, transform_indices = @transform_6, window_bounds = array<i64: 1, 128>}, {transform_indices = @transform_7, window_bounds = array<i64: 16, 128>}]} {
    %c0 = arith.constant 0 : index
    %c0_0 = arith.constant 0 : index
    %0 = vector.load %arg1[%c0, %c0_0] : memref<16x896xbf16, #tpu.memory_space<vmem>>, vector<16x896xbf16>
    %c0_1 = arith.constant 0 : index
    %c0_2 = arith.constant 0 : index
    %1 = vector.load %arg2[%c0_1, %c0_2] : memref<896x128xbf16, #tpu.memory_space<vmem>>, vector<896x128xbf16>
    %cst = arith.constant dense<0.000000e+00> : vector<16x128xf32>
    %2 = tpu.matmul %0, %1, %cst {dimension_numbers = #tpu.dot_dimension_numbers<[1], [0], [0], [1], [0, 0, 1, 1], [], []>} : vector<16x896xbf16>, vector<896x128xbf16>, vector<16x128xf32> -> vector<16x128xf32>
    %c0_3 = arith.constant 0 : index
    %c0_4 = arith.constant 0 : index
    %3 = vector.load %arg3[%c0_3, %c0_4] : memref<1x128xf32, #tpu.memory_space<vmem>>, vector<1x128xf32>
    %4 = vector.broadcast %3 : vector<1x128xf32> to vector<16x128xf32>
    %5 = arith.addf %2, %4 : vector<16x128xf32>
    %cst_5 = arith.constant dense<0.000000e+00> : vector<16xf32>
    %6 = vector.multi_reduction <add>, %5, %cst_5 [1] : vector<16x128xf32> to vector<16xf32>
    %7 = vector.shape_cast %6 : vector<16xf32> to vector<16x1xf32>
    %cst_6 = arith.constant 1.280000e+02 : f32
    %8 = vector.broadcast %cst_6 : f32 to vector<16x1xf32>
    %9 = arith.divf %7, %8 : vector<16x1xf32>
    %10 = vector.broadcast %9 : vector<16x1xf32> to vector<16x128xf32>
    %11 = arith.subf %5, %10 : vector<16x128xf32>
    %12 = arith.mulf %11, %11 : vector<16x128xf32>
    %cst_7 = arith.constant dense<0.000000e+00> : vector<16xf32>
    %13 = vector.multi_reduction <add>, %12, %cst_7 [1] : vector<16x128xf32> to vector<16xf32>
    %14 = vector.shape_cast %13 : vector<16xf32> to vector<16x1xf32>
    %cst_8 = arith.constant 1.280000e+02 : f32
    %15 = vector.broadcast %cst_8 : f32 to vector<16x1xf32>
    %16 = arith.divf %14, %15 : vector<16x1xf32>
    %cst_9 = arith.constant 9.99999974E-6 : f32
    %17 = vector.broadcast %cst_9 : f32 to vector<16x1xf32>
    %18 = arith.addf %16, %17 : vector<16x1xf32>
    %19 = math.rsqrt %18 : vector<16x1xf32>
    %20 = vector.broadcast %19 : vector<16x1xf32> to vector<16x128xf32>
    %21 = arith.mulf %11, %20 : vector<16x128xf32>
    %22 = arith.truncf %21 : vector<16x128xf32> to vector<16x128xbf16>
    %c0_10 = arith.constant 0 : index
    %c0_11 = arith.constant 0 : index
    %23 = vector.load %arg4[%c0_10, %c0_11] : memref<128x128xbf16, #tpu.memory_space<vmem>>, vector<128x128xbf16>
    %cst_12 = arith.constant dense<0.000000e+00> : vector<16x128xf32>
    %24 = tpu.matmul %22, %23, %cst_12 {dimension_numbers = #tpu.dot_dimension_numbers<[1], [0], [0], [1], [0, 0, 1, 1], [], []>} : vector<16x128xbf16>, vector<128x128xbf16>, vector<16x128xf32> -> vector<16x128xf32>
    %c0_13 = arith.constant 0 : index
    %c0_14 = arith.constant 0 : index
    %25 = vector.load %arg5[%c0_13, %c0_14] : memref<1x128xf32, #tpu.memory_space<vmem>>, vector<1x128xf32>
    %26 = vector.broadcast %25 : vector<1x128xf32> to vector<16x128xf32>
    %27 = arith.addf %24, %26 : vector<16x128xf32>
    %cst_15 = arith.constant 0.000000e+00 : f32
    %28 = vector.broadcast %cst_15 : f32 to vector<16x128xf32>
    %29 = arith.maximumf %27, %28 : vector<16x128xf32>
    %30 = arith.truncf %29 : vector<16x128xf32> to vector<16x128xbf16>
    %c0_16 = arith.constant 0 : index
    %c0_17 = arith.constant 0 : index
    %31 = vector.load %arg6[%c0_16, %c0_17] : memref<128x128xbf16, #tpu.memory_space<vmem>>, vector<128x128xbf16>
    %cst_18 = arith.constant dense<0.000000e+00> : vector<16x128xf32>
    %32 = tpu.matmul %30, %31, %cst_18 {dimension_numbers = #tpu.dot_dimension_numbers<[1], [0], [0], [1], [0, 0, 1, 1], [], []>} : vector<16x128xbf16>, vector<128x128xbf16>, vector<16x128xf32> -> vector<16x128xf32>
    %c0_19 = arith.constant 0 : index
    %c0_20 = arith.constant 0 : index
    %33 = vector.load %arg7[%c0_19, %c0_20] : memref<1x128xf32, #tpu.memory_space<vmem>>, vector<1x128xf32>
    %34 = vector.broadcast %33 : vector<1x128xf32> to vector<16x128xf32>
    %35 = arith.addf %32, %34 : vector<16x128xf32>
    %36 = arith.truncf %35 : vector<16x128xf32> to vector<16x128xbf16>
    %c0_21 = arith.constant 0 : index
    %c0_22 = arith.constant 0 : index
    %37 = vector.load %arg8[%c0_21, %c0_22] : memref<16x128xbf16, #tpu.memory_space<vmem>>, vector<16x128xbf16>
    tpu.vector_store %arg8[%c0_21, %c0_22], %36 {strides = array<i32>} : memref<16x128xbf16, #tpu.memory_space<vmem>>, vector<16x128xbf16>,
    return
  }
  func.func @transform_0(%arg0: i32) -> (i32, i32) {
    %c0_i32 = arith.constant 0 : i32
    %c0_i32_0 = arith.constant 0 : i32
    return %arg0, %c0_i32 : i32, i32
  }
  func.func @transform_1(%arg0: i32) -> (i32, i32) {
    %c0_i32 = arith.constant 0 : i32
    %c0_i32_0 = arith.constant 0 : i32
    %c0_i32_1 = arith.constant 0 : i32
    return %c0_i32, %c0_i32_0 : i32, i32
  }
  func.func @transform_2(%arg0: i32) -> (i32, i32) {
    %c0_i32 = arith.constant 0 : i32
    %c0_i32_0 = arith.constant 0 : i32
    %c0_i32_1 = arith.constant 0 : i32
    return %c0_i32, %c0_i32_0 : i32, i32
  }
  func.func @transform_3(%arg0: i32) -> (i32, i32) {
    %c0_i32 = arith.constant 0 : i32
    %c0_i32_0 = arith.constant 0 : i32
    %c0_i32_1 = arith.constant 0 : i32
    return %c0_i32, %c0_i32_0 : i32, i32
  }
  func.func @transform_4(%arg0: i32) -> (i32, i32) {
    %c0_i32 = arith.constant 0 : i32
    %c0_i32_0 = arith.constant 0 : i32
    %c0_i32_1 = arith.constant 0 : i32
    return %c0_i32, %c0_i32_0 : i32, i32
  }
  func.func @transform_5(%arg0: i32) -> (i32, i32) {
    %c0_i32 = arith.constant 0 : i32
    %c0_i32_0 = arith.constant 0 : i32
    %c0_i32_1 = arith.constant 0 : i32
    return %c0_i32, %c0_i32_0 : i32, i32
  }
  func.func @transform_6(%arg0: i32) -> (i32, i32) {
    %c0_i32 = arith.constant 0 : i32
    %c0_i32_0 = arith.constant 0 : i32
    %c0_i32_1 = arith.constant 0 : i32
    return %c0_i32, %c0_i32_0 : i32, i32
  }
  func.func @transform_7(%arg0: i32) -> (i32, i32) {
    %c0_i32 = arith.constant 0 : i32
    %c0_i32_0 = arith.constant 0 : i32
    return %arg0, %c0_i32 : i32, i32
  }
}

module attributes {stable_mosaic.version = 11 : i64} {
  func.func @mnist_mha_kernel(%arg0: i32, %arg1: memref<16x896xbf16, #tpu.memory_space<vmem>>, %arg2: memref<896x128xbf16, #tpu.memory_space<vmem>>, %arg3: memref<1x128xf32, #tpu.memory_space<vmem>>, %arg4: memref<128x128xbf16, #tpu.memory_space<vmem>>, %arg5: memref<1x128xf32, #tpu.memory_space<vmem>>, %arg6: memref<128x128xbf16, #tpu.memory_space<vmem>>, %arg7: memref<1x128xf32, #tpu.memory_space<vmem>>, %arg8: memref<16x128xbf16, #tpu.memory_space<vmem>>) attributes {dimension_semantics = [#tpu.dimension_semantics<parallel>], iteration_bounds = array<i64: 1>, scalar_prefetch = 0 : i64, scratch_operands = 0 : i64, tpu.core_type = #tpu.core_type<tc>, window_params = [{transform_indices = @transform_0, window_bounds = array<i64: 16, 896>}, {pipeline_mode = #tpu.pipeline_mode<synchronous>, transform_indices = @transform_1, window_bounds = array<i64: 896, 128>}, {pipeline_mode = #tpu.pipeline_mode<synchronous>, transform_indices = @transform_2, window_bounds = array<i64: 1, 128>}, {pipeline_mode = #tpu.pipeline_mode<synchronous>, transform_indices = @transform_3, window_bounds = array<i64: 128, 128>}, {pipeline_mode = #tpu.pipeline_mode<synchronous>, transform_indices = @transform_4, window_bounds = array<i64: 1, 128>}, {pipeline_mode = #tpu.pipeline_mode<synchronous>, transform_indices = @transform_5, window_bounds = array<i64: 128, 128>}, {pipeline_mode = #tpu.pipeline_mode<synchronous>, transform_indices = @transform_6, window_bounds = array<i64: 1, 128>}, {transform_indices = @transform_7, window_bounds = array<i64: 16, 128>}]} {
    %c0 = arith.constant 0 : index
    %c0_0 = arith.constant 0 : index
    %0 = vector.load %arg1[%c0, %c0_0] : memref<16x896xbf16, #tpu.memory_space<vmem>>, vector<16x896xbf16>
    %c0_1 = arith.constant 0 : index
    %c0_2 = arith.constant 0 : index
    %1 = vector.load %arg2[%c0_1, %c0_2] : memref<896x128xbf16, #tpu.memory_space<vmem>>, vector<896x128xbf16>
    %cst = arith.constant dense<0.000000e+00> : vector<16x128xf32>
    %2 = tpu.matmul %0, %1, %cst {dimension_numbers = #tpu.dot_dimension_numbers<[1], [0], [0], [1], [0, 0, 1, 1], [], []>} : vector<16x896xbf16>, vector<896x128xbf16>, vector<16x128xf32> -> vector<16x128xf32>
    %c0_3 = arith.constant 0 : index
    %c0_4 = arith.constant 0 : index
    %3 = vector.load %arg3[%c0_3, %c0_4] : memref<1x128xf32, #tpu.memory_space<vmem>>, vector<1x128xf32>
    %4 = vector.broadcast %3 : vector<1x128xf32> to vector<16x128xf32>
    %5 = arith.addf %2, %4 : vector<16x128xf32>
    %cst_5 = arith.constant dense<0.000000e+00> : vector<16xf32>
    %6 = vector.multi_reduction <add>, %5, %cst_5 [1] : vector<16x128xf32> to vector<16xf32>
    %7 = vector.shape_cast %6 : vector<16xf32> to vector<16x1xf32>
    %cst_6 = arith.constant 1.280000e+02 : f32
    %8 = vector.broadcast %cst_6 : f32 to vector<16x1xf32>
    %9 = arith.divf %7, %8 : vector<16x1xf32>
    %10 = vector.broadcast %9 : vector<16x1xf32> to vector<16x128xf32>
    %11 = arith.subf %5, %10 : vector<16x128xf32>
    %12 = arith.mulf %11, %11 : vector<16x128xf32>
    %cst_7 = arith.constant dense<0.000000e+00> : vector<16xf32>
    %13 = vector.multi_reduction <add>, %12, %cst_7 [1] : vector<16x128xf32> to vector<16xf32>
    %14 = vector.shape_cast %13 : vector<16xf32> to vector<16x1xf32>
    %cst_8 = arith.constant 1.280000e+02 : f32
    %15 = vector.broadcast %cst_8 : f32 to vector<16x1xf32>
    %16 = arith.divf %14, %15 : vector<16x1xf32>
    %cst_9 = arith.constant 9.99999974E-6 : f32
    %17 = vector.broadcast %cst_9 : f32 to vector<16x1xf32>
    %18 = arith.addf %16, %17 : vector<16x1xf32>
    %19 = math.rsqrt %18 : vector<16x1xf32>
    %20 = vector.broadcast %19 : vector<16x1xf32> to vector<16x128xf32>
    %21 = arith.mulf %11, %20 : vector<16x128xf32>
    %22 = arith.truncf %21 : vector<16x128xf32> to vector<16x128xbf16>
    %c0_10 = arith.constant 0 : index
    %c0_11 = arith.constant 0 : index
    %23 = vector.load %arg4[%c0_10, %c0_11] : memref<128x128xbf16, #tpu.memory_space<vmem>>, vector<128x128xbf16>
    %cst_12 = arith.constant dense<0.000000e+00> : vector<16x128xf32>
    %24 = tpu.matmul %22, %23, %cst_12 {dimension_numbers = #tpu.dot_dimension_numbers<[1], [0], [0], [1], [0, 0, 1, 1], [], []>} : vector<16x128xbf16>, vector<128x128xbf16>, vector<16x128xf32> -> vector<16x128xf32>
    %c0_13 = arith.constant 0 : index
    %c0_14 = arith.constant 0 : index
    %25 = vector.load %arg5[%c0_13, %c0_14] : memref<1x128xf32, #tpu.memory_space<vmem>>, vector<1x128xf32>
    %26 = vector.broadcast %25 : vector<1x128xf32> to vector<16x128xf32>
    %27 = arith.addf %24, %26 : vector<16x128xf32>
    %cst_15 = arith.constant 0.000000e+00 : f32
    %28 = vector.broadcast %cst_15 : f32 to vector<16x128xf32>
    %29 = arith.maximumf %27, %28 : vector<16x128xf32>
    %30 = arith.truncf %29 : vector<16x128xf32> to vector<16x128xbf16>
    %c0_16 = arith.constant 0 : index
    %c0_17 = arith.constant 0 : index
    %31 = vector.load %arg6[%c0_16, %c0_17] : memref<128x128xbf16, #tpu.memory_space<vmem>>, vector<128x128xbf16>
    %cst_18 = arith.constant dense<0.000000e+00> : vector<16x128xf32>
    %32 = tpu.matmul %30, %31, %cst_18 {dimension_numbers = #tpu.dot_dimension_numbers<[1], [0], [0], [1], [0, 0, 1, 1], [], []>} : vector<16x128xbf16>, vector<128x128xbf16>, vector<16x128xf32> -> vector<16x128xf32>
    %c0_19 = arith.constant 0 : index
    %c0_20 = arith.constant 0 : index
    %33 = vector.load %arg7[%c0_19, %c0_20] : memref<1x128xf32, #tpu.memory_space<vmem>>, vector<1x128xf32>
    %34 = vector.broadcast %33 : vector<1x128xf32> to vector<16x128xf32>
    %35 = arith.addf %32, %34 : vector<16x128xf32>
    %36 = arith.truncf %35 : vector<16x128xf32> to vector<16x128xbf16>
    %c0_21 = arith.constant 0 : index
    %c0_22 = arith.constant 0 : index
    %37 = vector.load %arg8[%c0_21, %c0_22] : memref<16x128xbf16, #tpu.memory_space<vmem>>, vector<16x128xbf16>
    tpu.vector_store %arg8[%c0_21, %c0_22], %36 {strides = array<i32>} : memref<16x128xbf16, #tpu.memory_space<vmem>>, vector<16x128xbf16>,
    return
  }
  func.func @transform_0(%arg0: i32) -> (i32, i32) {
    %c0_i32 = arith.constant 0 : i32
    %c0_i32_0 = arith.constant 0 : i32
    return %arg0, %c0_i32 : i32, i32
  }
  func.func @transform_1(%arg0: i32) -> (i32, i32) {
    %c0_i32 = arith.constant 0 : i32
    %c0_i32_0 = arith.constant 0 : i32
    %c0_i32_1 = arith.constant 0 : i32
    return %c0_i32, %c0_i32_0 : i32, i32
  }
  func.func @transform_2(%arg0: i32) -> (i32, i32) {
    %c0_i32 = arith.constant 0 : i32
    %c0_i32_0 = arith.constant 0 : i32
    %c0_i32_1 = arith.constant 0 : i32
    return %c0_i32, %c0_i32_0 : i32, i32
  }
  func.func @transform_3(%arg0: i32) -> (i32, i32) {
    %c0_i32 = arith.constant 0 : i32
    %c0_i32_0 = arith.constant 0 : i32
    %c0_i32_1 = arith.constant 0 : i32
    return %c0_i32, %c0_i32_0 : i32, i32
  }
  func.func @transform_4(%arg0: i32) -> (i32, i32) {
    %c0_i32 = arith.constant 0 : i32
    %c0_i32_0 = arith.constant 0 : i32
    %c0_i32_1 = arith.constant 0 : i32
    return %c0_i32, %c0_i32_0 : i32, i32
  }
  func.func @transform_5(%arg0: i32) -> (i32, i32) {
    %c0_i32 = arith.constant 0 : i32
    %c0_i32_0 = arith.constant 0 : i32
    %c0_i32_1 = arith.constant 0 : i32
    return %c0_i32, %c0_i32_0 : i32, i32
  }
  func.func @transform_6(%arg0: i32) -> (i32, i32) {
    %c0_i32 = arith.constant 0 : i32
    %c0_i32_0 = arith.constant 0 : i32
    %c0_i32_1 = arith.constant 0 : i32
    return %c0_i32, %c0_i32_0 : i32, i32
  }
  func.func @transform_7(%arg0: i32) -> (i32, i32) {
    %c0_i32 = arith.constant 0 : i32
    %c0_i32_0 = arith.constant 0 : i32
    return %arg0, %c0_i32 : i32, i32
  }
}

</mosaic_0001>

<bundles_post_ra>
// kernel: tpu_custom_call.1
= control target key start
LH: loop header
LB: loop body
LE: loop exit
PB: predicated region body
PF: predicated region fallthrough
CT: control target
= control target key end

     0   :  { %12 = vsyncpa [#allocation3], 0  ;;  %s1654_s0 = inlined_call_operand.hbm [shape: bf16[16,896], index: 0, kind: input, shape index: {}]   ;;  %s1655_s1 = inlined_call_operand.hbm [shape: bf16[896,128], index: 1, kind: input, shape index: {}]   ;;  %s1656_s2 = inlined_call_operand.vmem [shape: f32[1,128], index: 2, kind: input, shape index: {}]   ;;  %s1657_s3 = inlined_call_operand.hbm [shape: bf16[128,128], index: 3, kind: input, shape index: {}]   ;;  %s1658_s4 = inlined_call_operand.vmem [shape: f32[1,128], index: 4, kind: input, shape index: {}]   ;;  %s1659_s5 = inlined_call_operand.hbm [shape: bf16[128,128], index: 5, kind: input, shape index: {}]   ;;  %s1660_s6 = inlined_call_operand.vmem [shape: f32[1,128], index: 6, kind: input, shape index: {}]   ;;  %s1661_s7 = inlined_call_operand.hbm [shape: bf16[16,128], index: 7, kind: output, shape index: {}]  }
   0x1   :  { %13 = vsyncpa [#allocation6], 0 }
   0x2   :  { %14 = vsyncpa [#allocation9], 0 }
   0x3   :  { %15 = vsyncpa [#allocation4], 0  ;;  %s1485_s24 = smov [#allocation5]   ;;  %s1367_s28 = scalar_lea.hbm %s1655_s1, 7168 }
   0x4   :  { %s33_s25 = sshll.u32 %s1485_s24, 4  ;;  %p1368_p0 = scmp.ne.s32.totalorder %s1655_s1, %s1367_s28  ;;  %s34_s25 = int_to_ptr.vmem [resolvable:$true] %s33_s25 }
   0x5   :  { %p1371_p1 = scmp.lt.u32.totalorder %s1367_s28, %s1655_s1 }
   0x7   :  { %p1373_p2 = pnand %p1371_p1, %p1368_p0 }
   0x9   :  { %1376 = shalt.err (!%p1373_p2)
}
   0xa   :  { %s1377_s10 = scalar_lea.vmem %s34_s25, 7168  ;;  %p1382_p4 = scmp.lt.s32.totalorder %s34_s25, %s34_s25 }
   0xb   :  { %p1378_p3 = scmp.ne.s32.totalorder %s34_s25, %s1377_s10  ;;  %p1383_p5 = scmp.lt.s32.totalorder %s1377_s10, %s1377_s10 }
   0xd   :  { %p1384_p6 = por %p1383_p5, %p1382_p4 }
   0xf   :  { %p1385_p7 = pnand %p1384_p6, %p1378_p3 }
  0x11   :  { %1388 = shalt.err (!%p1385_p7)
}
  0x12   :  { %s1486_s11 = smov 64   ;;  %s1487_s12 = smov 4  }
  0x13   :  { %39 = dma.hbm_to_vmem [thread:$0]  %s1655_s1, 7168, %s34_s25, [#allocation6], %s1486_s11, %s1486_s11, %s1487_s12  }
  0x14   :  { %s1488_s15 = smov [#allocation2]   ;;  %s1389_s19 = scalar_lea.hbm %s1654_s0, 896 }
  0x15   :  { %s21_s16 = sshll.u32 %s1488_s15, 4  ;;  %p1390_p8 = scmp.ne.s32.totalorder %s1654_s0, %s1389_s19  ;;  %s22_s16 = int_to_ptr.vmem [resolvable:$true] %s21_s16 }
  0x16   :  { %p1393_p9 = scmp.lt.u32.totalorder %s1389_s19, %s1654_s0 }
  0x18   :  { %p1395_p10 = pnand %p1393_p9, %p1390_p8 }
  0x1a   :  { %1398 = shalt.err (!%p1395_p10)
}
  0x1b   :  { %s1399_s24 = scalar_lea.vmem %s22_s16, 896  ;;  %p1404_p12 = scmp.lt.s32.totalorder %s22_s16, %s22_s16 }
  0x1c   :  { %p1400_p11 = scmp.ne.s32.totalorder %s22_s16, %s1399_s24  ;;  %p1405_p13 = scmp.lt.s32.totalorder %s1399_s24, %s1399_s24 }
  0x1e   :  { %p1406_p0 = por %p1405_p13, %p1404_p12 }
  0x20   :  { %p1407_p1 = pnand %p1406_p0, %p1400_p11 }
  0x22   :  { %1410 = shalt.err (!%p1407_p1)
}
  0x23   :  { %s1489_s1 = smov 448   ;;  %s1490_s25 = smov 28  }
  0x24   :  { %27 = dma.hbm_to_vmem [thread:$0]  %s1654_s0, 896, %s22_s16, [#allocation3], %s1489_s1, %s1489_s1, %s1490_s25  }
  0x25   :  { %s1491_s28 = smov [#allocation7]   ;;  %s1492_s30 = smov [#allocation8]  }
  0x26   :  { %s47_s29 = sshll.u32 %s1491_s28, 4  ;;  %s61_s8 = sshll.u32 %s1492_s30, 4  ;;  %s48_s29 = int_to_ptr.vmem [resolvable:$true] %s47_s29  ;;  %s1563_s8 = int_to_ptr.vmem [resolvable:$true] %s61_s8 }
  0x27   :  { %s1411_s13 = scalar_lea.hbm %s1657_s3, 1024 }
  0x28   :  { %p1412_p2 = scmp.ne.s32.totalorder %s1657_s3, %s1411_s13  ;;  %p1415_p3 = scmp.lt.u32.totalorder %s1411_s13, %s1657_s3 }
  0x2a   :  { %p1417_p4 = pnand %p1415_p3, %p1412_p2 }
  0x2c   :  { %1420 = shalt.err (!%p1417_p4)
}
  0x2d   :  { %s1421_s0 = scalar_lea.vmem %s48_s29, 1024  ;;  %p1426_p6 = scmp.lt.s32.totalorder %s48_s29, %s48_s29 }
  0x2e   :  { %p1422_p5 = scmp.ne.s32.totalorder %s48_s29, %s1421_s0  ;;  %p1427_p7 = scmp.lt.s32.totalorder %s1421_s0, %s1421_s0 }
  0x30   :  { %p1428_p8 = por %p1427_p7, %p1426_p6 }
  0x32   :  { %p1429_p9 = pnand %p1428_p8, %p1422_p5 }
  0x34   :  { %1432 = shalt.err (!%p1429_p9)
}
  0x35   :  { %53 = dma.hbm_to_vmem [thread:$0]  %s1657_s3, 1024, %s48_s29, [#allocation6], %s1486_s11, %s1486_s11, %s1487_s12  }
  0x36   :  { %s1433_s22 = scalar_lea.hbm %s1659_s5, 1024 }
  0x37   :  { %p1434_p10 = scmp.ne.s32.totalorder %s1659_s5, %s1433_s22  ;;  %p1437_p11 = scmp.lt.u32.totalorder %s1433_s22, %s1659_s5 }
  0x39   :  { %p1439_p12 = pnand %p1437_p11, %p1434_p10 }
  0x3b   :  { %1442 = shalt.err (!%p1439_p12)
}
  0x3c   :  { %s1443_s26 = scalar_lea.vmem %s1563_s8, 1024  ;;  %p1448_p0 = scmp.lt.s32.totalorder %s1563_s8, %s1563_s8 }
  0x3d   :  { %p1444_p13 = scmp.ne.s32.totalorder %s1563_s8, %s1443_s26  ;;  %p1449_p1 = scmp.lt.s32.totalorder %s1443_s26, %s1443_s26 }
  0x3f   :  { %p1450_p2 = por %p1449_p1, %p1448_p0 }
  0x41   :  { %p1451_p3 = pnand %p1450_p2, %p1444_p13 }
  0x43   :  { %1454 = shalt.err (!%p1451_p3)
}
  0x44   :  { %67 = dma.hbm_to_vmem [thread:$0]  %s1659_s5, 1024, %s1563_s8, [#allocation9], %s1486_s11, %s1486_s11, %s1487_s12  }
  0x45   :  { %1477 = dma.done.wait [#allocation3], 896  }
  0x46   :  { %1478 = vsyncadd [#allocation3], 4294966400 }
  0x47   :  { %1479 = dma.done.wait [#allocation6], 8192  }
  0x48   :  { %1480 = vsyncadd [#allocation6], 4294959104 }
  0x49   :  { %1481 = dma.done.wait [#allocation9], 1024  }
  0x4a   :  { %1482 = vsyncadd [#allocation9], 4294966272  ;;  %v1281_v0 = vld [vmem:[#allocation5 + $0x40] sm:$0xff]   ;;  %v1285_v4 = vld [vmem:[#allocation5 + $0x48] sm:$0xff]   ;;  %v1493_v38 = vmov 0.0   ;;  %vm1494_vm0 = vmmov 0  }
  0x4b   :  { %v1282_v1 = vld [vmem:[#allocation5] sm:$0xff]   ;;  %1117 = vmatprep.subr.bf16.mxu0 %v1281_v0  ;;  %v1286_v5 = vld [vmem:[#allocation5 + $0x8] sm:$0xff]   ;;  %v1289_v8 = vld [vmem:[#allocation5 + $0x50] sm:$0xff]   ;;  %s1495_s9 = smov [#allocation10]  }
  0x4c   :  { %v1283_v2 = vld [vmem:[#allocation5 + $0xc0] sm:$0xff]   ;;  %1118 = vmatpush3.bf16.msra.mxu0 %v1282_v1  ;;  %v1287_v6 = vld [vmem:[#allocation5 + $0xc8] sm:$0xff]   ;;  %v1290_v9 = vld [vmem:[#allocation5 + $0x10] sm:$0xff]   ;;  %s1012_s10 = sshll.u32 %s1495_s9, 4  ;;  %s1013_s10 = int_to_ptr.vmem [resolvable:$true] %s1012_s10 }
  0x4d   :  { %v1284_v3 = vld [vmem:[#allocation5 + $0x80] sm:$0xff]   ;;  %1139 = vmatprep.subr.bf16.mxu1 %v1283_v2  ;;  %1119 = vmatprep.subr.bf16.mxu0 %v1285_v4  ;;  %v1288_v7 = vld [vmem:[#allocation5 + $0x88] sm:$0xff]   ;;  %v1291_v10 = vld [vmem:[#allocation5 + $0xd0] sm:$0xff]   ;;  %p1460_p5 = scmp.lt.s32.totalorder %s1013_s10, %s1013_s10 }
  0x4e   :  { %1140 = vmatpush3.bf16.msra.mxu1 %v1284_v3  ;;  %v1292_v11 = vld [vmem:[#allocation5 + $0x90] sm:$0xff]   ;;  %v1293_v12 = vld [vmem:[#allocation5 + $0x58] sm:$0xff]   ;;  %v1297_v16 = vld [vmem:[#allocation5 + $0x60] sm:$0xff]  }
  0x4f   :  { %1141 = vmatprep.subr.bf16.mxu1 %v1287_v6  ;;  %v1294_v13 = vld [vmem:[#allocation5 + $0x18] sm:$0xff]   ;;  %v1298_v17 = vld [vmem:[#allocation5 + $0x20] sm:$0xff]   ;;  %v1301_v20 = vld [vmem:[#allocation5 + $0x68] sm:$0xff]  }
  0x50   :  { %1120 = vmatpush3.bf16.msra.mxu0 %v1286_v5  ;;  %v1295_v14 = vld [vmem:[#allocation5 + $0xd8] sm:$0xff]   ;;  %v1299_v18 = vld [vmem:[#allocation5 + $0xe0] sm:$0xff]   ;;  %v1302_v21 = vld [vmem:[#allocation5 + $0x28] sm:$0xff]  }
  0x51   :  { %1121 = vmatprep.subr.bf16.mxu0 %v1289_v8  ;;  %v1296_v15 = vld [vmem:[#allocation5 + $0x98] sm:$0xff]   ;;  %v1300_v19 = vld [vmem:[#allocation5 + $0xa0] sm:$0xff]   ;;  %v1303_v22 = vld [vmem:[#allocation5 + $0xe8] sm:$0xff]  }
  0x52   :  { %1142 = vmatpush3.bf16.msra.mxu1 %v1288_v7  ;;  %v1304_v23 = vld [vmem:[#allocation5 + $0xa8] sm:$0xff]   ;;  %v1305_v24 = vld [vmem:[#allocation5 + $0x70] sm:$0xff]   ;;  %v1309_v28 = vld [vmem:[#allocation5 + $0x78] sm:$0xff]  }
  0x53   :  { %1143 = vmatprep.subr.bf16.mxu1 %v1291_v10  ;;  %v1306_v25 = vld [vmem:[#allocation5 + $0x30] sm:$0xff]   ;;  %v1310_v29 = vld [vmem:[#allocation5 + $0x38] sm:$0xff]   ;;  %v1312_v31 = vld [vmem:[#allocation2] ss:$28 sps:$4 sm:$0xff]  }
  0x54   :  { %1122 = vmatpush3.bf16.msra.mxu0 %v1290_v9  ;;  %v1307_v26 = vld [vmem:[#allocation5 + $0xf0] sm:$0xff]   ;;  %v1311_v30 = vld [vmem:[#allocation5 + $0xf8] sm:$0xff]   ;;  %v1314_v32 = vld [vmem:[#allocation2 + $0x4] ss:$28 sps:$4 sm:$0xff]  }
  0x55   :  { %1123 = vmatprep.subr.bf16.mxu0 %v1293_v12  ;;  %v1308_v27 = vld [vmem:[#allocation5 + $0xb0] sm:$0xff]   ;;  %v1315_v33 = vld [vmem:[#allocation5 + $0xb8] sm:$0xff]   ;;  %614 = vmatprep.mubr.bf16.mxu0 %v1314_v32  ;;  %v1316_v34 = vld [vmem:[#allocation5 + $0x140] sm:$0xff]  }
  0x56   :  { %1144 = vmatpush3.bf16.msra.mxu1 %v1292_v11  ;;  %v1317_v35 = vld [vmem:[#allocation2 + $0x8] ss:$28 sps:$4 sm:$0xff]   ;;  %v1320_v37 = vld [vmem:[#allocation5 + $0x100] sm:$0xff]   ;;  %v1328_v46 = vld [vmem:[#allocation5 + $0x158] sm:$0xff]  }
  0x57   :  { %1145 = vmatprep.subr.bf16.mxu1 %v1295_v14  ;;  %v1319_v36 = vld [vmem:[#allocation2 + $0xc] ss:$28 sps:$4 sm:$0xff]   ;;  %v1321_v39 = vld [vmem:[#allocation5 + $0x180] sm:$0xff]   ;;  %v1322_v40 = vld [vmem:[#allocation5 + $0x148] sm:$0xff]  }
  0x58   :  { %1124 = vmatpush3.bf16.msra.mxu0 %v1294_v13  ;;  %655 = vmatprep.mubr.bf16.mxu1 %v1319_v36  ;;  %v1323_v41 = vld [vmem:[#allocation5 + $0x108] sm:$0xff]   ;;  %v1325_v43 = vld [vmem:[#allocation5 + $0x150] sm:$0xff]   ;;  %v1329_v47 = vld [vmem:[#allocation5 + $0x118] sm:$0xff]  }
  0x59   :  { %1125 = vmatprep.subr.bf16.mxu0 %v1297_v16  ;;  %v1324_v42 = vld [vmem:[#allocation5 + $0x188] sm:$0xff]   ;;  %v1326_v44 = vld [vmem:[#allocation5 + $0x110] sm:$0xff]   ;;  %v1330_v48 = vld [vmem:[#allocation5 + $0x198] sm:$0xff]  }
  0x5a   :  { %1146 = vmatpush3.bf16.msra.mxu1 %v1296_v15  ;;  %v1327_v45 = vld [vmem:[#allocation5 + $0x190] sm:$0xff]   ;;  %v1331_v49 = vld [vmem:[#allocation5 + $0x160] sm:$0xff]   ;;  %v1334_v52 = vld [vmem:[#allocation5 + $0x168] sm:$0xff]  }
  0x5b   :  { %1147 = vmatprep.subr.bf16.mxu1 %v1299_v18  ;;  %v1332_v50 = vld [vmem:[#allocation5 + $0x120] sm:$0xff]   ;;  %v1335_v53 = vld [vmem:[#allocation5 + $0x128] sm:$0xff]   ;;  %v1337_v55 = vld [vmem:[#allocation5 + $0x170] sm:$0xff]  }
  0x5c   :  { %1126 = vmatpush3.bf16.msra.mxu0 %v1298_v17  ;;  %v1333_v51 = vld [vmem:[#allocation5 + $0x1a0] sm:$0xff]   ;;  %v1336_v54 = vld [vmem:[#allocation5 + $0x1a8] sm:$0xff]   ;;  %v1338_v56 = vld [vmem:[#allocation5 + $0x130] sm:$0xff]  }
  0x5d   :  { %1127 = vmatprep.subr.bf16.mxu0 %v1301_v20  ;;  %v1339_v57 = vld [vmem:[#allocation5 + $0x1b0] sm:$0xff]   ;;  %v1344_v58 = vld [vmem:[#allocation2 + $0x14] ss:$28 sps:$4 sm:$0xff]   ;;  %v1026_v1 = vld [vmem:[%s1656_s2] ss:$0 sm:$0xff] }
  0x5e   :  { %1148 = vmatpush3.bf16.msra.mxu1 %v1300_v19  ;;  %v1340_v59 = vld [vmem:[#allocation5 + $0x178] sm:$0xff]   ;;  %v1348_v32 = vld [vmem:[#allocation7 + $0x8] sm:$0xff]  }
  0x5f   :  { %1149 = vmatprep.subr.bf16.mxu1 %v1303_v22  ;;  %v1341_v60 = vld [vmem:[#allocation5 + $0x138] sm:$0xff]  }
  0x60   :  { %1128 = vmatpush3.bf16.msra.mxu0 %v1302_v21  ;;  %v1345_v61 = vld [vmem:[#allocation5 + $0x1b8] sm:$0xff]  }
  0x61   :  { %1129 = vmatprep.subr.bf16.mxu0 %v1305_v24  ;;  %v1342_v62 = vld [vmem:[#allocation2 + $0x10] ss:$28 sps:$4 sm:$0xff]   ;;  %v1346_v63 = vld [vmem:[#allocation2 + $0x18] ss:$28 sps:$4 sm:$0xff]  }
  0x62   :  { %1150 = vmatpush3.bf16.msra.mxu1 %v1304_v23 }
  0x63   :  { %1151 = vmatprep.subr.bf16.mxu1 %v1307_v26 }
  0x64   :  { %1130 = vmatpush3.bf16.msra.mxu0 %v1306_v25 }
  0x65   :  { %1131 = vmatprep.subr.bf16.mxu0 %v1309_v28 }
  0x66   :  { %1152 = vmatpush3.bf16.msra.mxu1 %v1308_v27 }
  0x67   :  { %1153 = vmatprep.subr.bf16.mxu1 %v1311_v30 }
  0x68   :  { %1132 = vmatpush3.bf16.msra.mxu0 %v1310_v29 }
  0x69   :  { %1161 = vmatprep.subr.bf16.mxu0 %v1316_v34 }
  0x6a   :  { %1154 = vmatpush3.bf16.msra.mxu1 %v1315_v33 }
  0x6b   :  { %615 = vmatmul.mubr.bf16.vlgmr.msra.gmra.mrb[0].mxu0 %v1312_v31  ;;  %1210 = vmatprep.subr.bf16.mxu1 %v1493_v38  ;;  %v1347_v31 = vld [vmem:[#allocation7] sm:$0xff]  }
  0x6c   :  { %1162 = vmatpush3.bf16.msra.mxu0 %v1320_v37  ;;  %696 = vmatprep.mubr.bf16.mxu0 %v1344_v58 }
  0x6d   :  { %656 = vmatmul.mubr.bf16.vlgmr.msra.gmra.mrb[0].mxu1 %v1317_v35  ;;  %1163 = vmatprep.subr.bf16.mxu0 %v1322_v40 }
  0x6e   :  { %1211 = vmatpush3.bf16.msra.mxu1 %v1321_v39  ;;  %1226 = vmatprep.mubr.msk.bf16.mxu1 %vm1494_vm0, %v1493_v38 }
  0x6f   :  { %1212 = vmatprep.subr.bf16.mxu1 %v1493_v38 }
  0x70   :  { %1164 = vmatpush3.bf16.msra.mxu0 %v1323_v41 }
  0x71   :  { %1165 = vmatprep.subr.bf16.mxu0 %v1325_v43  ;;  %v1350_v43 = vld [vmem:[#allocation7 + $0x18] sm:$0xff]  }
  0x72   :  { %1213 = vmatpush3.bf16.msra.mxu1 %v1324_v42  ;;  %v1349_v42 = vld [vmem:[#allocation7 + $0x10] sm:$0xff]  }
  0x73   :  { %1214 = vmatprep.subr.bf16.mxu1 %v1493_v38 }
  0x74   :  { %1166 = vmatpush3.bf16.msra.mxu0 %v1326_v44  ;;  %v1351_v44 = vld [vmem:[#allocation7 + $0x20] sm:$0xff]  }
  0x75   :  { %1167 = vmatprep.subr.bf16.mxu0 %v1328_v46  ;;  %v1353_v46 = vld [vmem:[#allocation7 + $0x30] sm:$0xff]  }
  0x76   :  { %1215 = vmatpush3.bf16.msra.mxu1 %v1327_v45  ;;  %v1352_v45 = vld [vmem:[#allocation7 + $0x28] sm:$0xff]  }
  0x77   :  { %1216 = vmatprep.subr.bf16.mxu1 %v1493_v38 }
  0x78   :  { %1168 = vmatpush3.bf16.msra.mxu0 %v1329_v47  ;;  %v1354_v47 = vld [vmem:[#allocation7 + $0x38] sm:$0xff]  }
  0x79   :  { %1169 = vmatprep.subr.bf16.mxu0 %v1331_v49  ;;  %v1356_v49 = vld [vmem:[#allocation8 + $0x8] sm:$0xff]  }
  0x7a   :  { %1217 = vmatpush3.bf16.msra.mxu1 %v1330_v48  ;;  %v1355_v48 = vld [vmem:[#allocation8] sm:$0xff]  }
  0x7b   :  { %1218 = vmatprep.subr.bf16.mxu1 %v1493_v38 }
  0x7c   :  { %1170 = vmatpush3.bf16.msra.mxu0 %v1332_v50  ;;  %v1357_v50 = vld [vmem:[#allocation8 + $0x10] sm:$0xff]  }
  0x7d   :  { %1171 = vmatprep.subr.bf16.mxu0 %v1334_v52  ;;  %v1359_v52 = vld [vmem:[#allocation8 + $0x20] sm:$0xff]  }
  0x7e   :  { %1219 = vmatpush3.bf16.msra.mxu1 %v1333_v51  ;;  %v1358_v51 = vld [vmem:[#allocation8 + $0x18] sm:$0xff]  }
  0x7f   :  { %1220 = vmatprep.subr.bf16.mxu1 %v1493_v38 }
  0x80   :  { %1172 = vmatpush3.bf16.msra.mxu0 %v1335_v53  ;;  %v1360_v53 = vld [vmem:[#allocation8 + $0x28] sm:$0xff]  }
  0x81   :  { %1173 = vmatprep.subr.bf16.mxu0 %v1337_v55 }
  0x82   :  { %1221 = vmatpush3.bf16.msra.mxu1 %v1336_v54 }
  0x83   :  { %1222 = vmatprep.subr.bf16.mxu1 %v1493_v38 }
  0x84   :  { %1174 = vmatpush3.bf16.msra.mxu0 %v1338_v56 }
  0x85   :  { %1175 = vmatprep.subr.bf16.mxu0 %v1340_v59 }
  0x86   :  { %1223 = vmatpush3.bf16.msra.mxu1 %v1339_v57 }
  0x87   :  { %1224 = vmatprep.subr.bf16.mxu1 %v1493_v38 }
  0x88   :  { %1176 = vmatpush3.bf16.msra.mxu0 %v1341_v60 }
  0x89   :  { %1230 = vmatprep.subr.bf16.mxu0 %v1493_v38 }
  0x8a   :  { %1225 = vmatpush3.bf16.msra.mxu1 %v1345_v61 }
  0x8b   :  { %1250 = vmatprep.subr.bf16.mxu1 %v1493_v38  ;;  %697 = vmatmul.mubr.bf16.vlgmr.msra.gmra.mrb[4].mxu0 %v1342_v62 }
  0x8c   :  { %1246 = vmatprep.mubr.msk.bf16.mxu0 %vm1494_vm0, %v1493_v38  ;;  %1231 = vmatpush3.bf16.msra.mxu0 %v1347_v31 }
  0x8d   :  { %1227 = vmatmul.mubr.bf16.vlgmr.msra.gmra.mrb[4].mxu1 %v1346_v63  ;;  %1232 = vmatprep.subr.bf16.mxu0 %v1493_v38 }
  0x8e   :  { %1266 = vmatprep.mubr.msk.bf16.mxu1 %vm1494_vm0, %v1493_v38  ;;  %1251 = vmatpush3.bf16.msra.mxu1 %v1355_v48 }
  0x8f   :  { %1252 = vmatprep.subr.bf16.mxu1 %v1493_v38 }
  0x90   :  { %1233 = vmatpush3.bf16.msra.mxu0 %v1348_v32 }
  0x91   :  { %1234 = vmatprep.subr.bf16.mxu0 %v1493_v38 }
  0x92   :  { %1253 = vmatpush3.bf16.msra.mxu1 %v1356_v49 }
  0x93   :  { %1254 = vmatprep.subr.bf16.mxu1 %v1493_v38 }
  0x94   :  { %1235 = vmatpush3.bf16.msra.mxu0 %v1349_v42 }
  0x95   :  { %1236 = vmatprep.subr.bf16.mxu0 %v1493_v38 }
  0x96   :  { %1255 = vmatpush3.bf16.msra.mxu1 %v1357_v50 }
  0x97   :  { %1256 = vmatprep.subr.bf16.mxu1 %v1493_v38 }
  0x98   :  { %1237 = vmatpush3.bf16.msra.mxu0 %v1350_v43 }
  0x99   :  { %1238 = vmatprep.subr.bf16.mxu0 %v1493_v38 }
  0x9a   :  { %1257 = vmatpush3.bf16.msra.mxu1 %v1358_v51 }
  0x9b   :  { %1258 = vmatprep.subr.bf16.mxu1 %v1493_v38 }
  0x9c   :  { %1239 = vmatpush3.bf16.msra.mxu0 %v1351_v44 }
  0x9d   :  { %1240 = vmatprep.subr.bf16.mxu0 %v1493_v38 }
  0x9e   :  { %1259 = vmatpush3.bf16.msra.mxu1 %v1359_v52 }
  0x9f   :  { %1260 = vmatprep.subr.bf16.mxu1 %v1493_v38 }
  0xa0   :  { %1241 = vmatpush3.bf16.msra.mxu0 %v1352_v45 }
  0xa1   :  { %1242 = vmatprep.subr.bf16.mxu0 %v1493_v38 }
  0xa2   :  { %1261 = vmatpush3.bf16.msra.mxu1 %v1360_v53 }
  0xa3   :  { %1262 = vmatprep.subr.bf16.mxu1 %v1493_v38 }
  0xa4   :  { %1243 = vmatpush3.bf16.msra.mxu0 %v1353_v46 }
  0xa5   :  { %1244 = vmatprep.subr.bf16.mxu0 %v1493_v38 }
  0xa8   :  { %1245 = vmatpush3.bf16.msra.mxu0 %v1354_v47 }
 0x13e   :  { %v1133_v0 = vpop.f32.mrb[0].mxu0 }
 0x13f   :  { %v1134_v2 = vpop.f32.mrb[1].mxu0 }
 0x140   :  { %v1135_v3 = vadd.f32 %v1134_v2, %v1133_v0  ;;  %v1136_v4 = vpop.f32.mrb[2].mxu0  ;;  %v1155_v5 = vpop.f32.mrb[0].mxu1  ;;  %v1362_v2 = vld [vmem:[#allocation8 + $0x38] sm:$0xff]  }
 0x141   :  { %v1137_v6 = vpop.f32.mrb[3].mxu0  ;;  %v1156_v9 = vpop.f32.mrb[1].mxu1 }
 0x142   :  { %v617_v7 = vadd.f32 %v1135_v3, %v1026_v1  ;;  %v1138_v8 = vadd.f32 %v1137_v6, %v1136_v4  ;;  %v1157_v10 = vadd.f32 %v1156_v9, %v1155_v5  ;;  %v1158_v11 = vpop.f32.mrb[2].mxu1  ;;  %v1090_v3 = vld [vmem:[%s1658_s4] ss:$0 sm:$0xff]  ;;  %s1455_s4 = scalar_lea.vmem %s1013_s10, 128 }
 0x143   :  { %v1159_v13 = vpop.f32.mrb[3].mxu1  ;;  %p1456_p4 = scmp.ne.s32.totalorder %s1013_s10, %s1455_s4  ;;  %p1461_p6 = scmp.lt.s32.totalorder %s1455_s4, %s1455_s4 }
 0x144   :  { %v620_v12 = vadd.f32 %v1138_v8, %v1026_v1  ;;  %v658_v14 = vadd.f32 %v1157_v10, %v617_v7  ;;  %v1160_v15 = vadd.f32 %v1159_v13, %v1158_v11  ;;  %v1361_v1 = vld [vmem:[#allocation8 + $0x30] sm:$0xff]  }
 0x145   :  { %1263 = vmatpush3.bf16.msra.mxu1 %v1361_v1  ;;  %p1462_p7 = por %p1461_p6, %p1460_p5 }
 0x146   :  { %v661_v16 = vadd.f32 %v1160_v15, %v620_v12  ;;  %1264 = vmatprep.subr.bf16.mxu1 %v1493_v38  ;;  %v1099_v38 = vld [vmem:[%s1660_s6] ss:$0 sm:$0xff] }
 0x147   :  { %p1463_p8 = pnand %p1462_p7, %p1456_p4 }
 0x149   :  { %1265 = vmatpush3.bf16.msra.mxu1 %v1362_v2 }
 0x15e   :  { %v1177_v17 = vpop.f32.mrb[4].mxu0 }
 0x15f   :  { %v1178_v18 = vpop.f32.mrb[5].mxu0 }
 0x160   :  { %v739_v19 = vpop.f32.mrb[4].mxu1  ;;  %v1179_v20 = vadd.f32 %v1178_v18, %v1177_v17  ;;  %v1180_v21 = vpop.f32.mrb[6].mxu0 }
 0x161   :  { %v1228_v22 = vpop.f32.mrb[5].mxu1  ;;  %v1181_v23 = vpop.f32.mrb[7].mxu0 }
 0x162   :  { %v742_v24 = vpop.f32.mrb[6].mxu1  ;;  %v699_v25 = vadd.f32 %v1179_v20, %v658_v14  ;;  %v1182_v26 = vadd.f32 %v1181_v23, %v1180_v21 }
 0x163   :  { %v1229_v27 = vpop.f32.mrb[7].mxu1 }
 0x164   :  { %v740_v28 = vadd.f32 %v739_v19, %v699_v25  ;;  %v702_v29 = vadd.f32 %v1182_v26, %v661_v16 }
 0x166   :  { %v743_v30 = vadd.f32 %v742_v24, %v702_v29  ;;  %746 = vadd.xlane.f32.xlu0 %v740_v28 }
 0x16a   :  { %748 = vadd.xlane.f32.xlu0 %v743_v30 }
 0x1f3   :  { %v747_v33 = vpop.xlane.xlu0 %746 }
 0x1f4   :  { %v751_v34 = vmul.f32 0.0078125, %v747_v33 }
 0x1f6   :  { %v753_v35 = vsub.f32 %v740_v28, %v751_v34 }
 0x1f7   :  { %v749_v36 = vpop.xlane.xlu0 %748 }
 0x1f8   :  { %v752_v37 = vmul.f32 0.0078125, %v749_v36  ;;  %v755_v39 = vmul.f32 %v753_v35, %v753_v35 }
 0x1fa   :  { %v754_v40 = vsub.f32 %v743_v30, %v752_v37  ;;  %757 = vadd.xlane.f32.xlu1 %v755_v39 }
 0x1fc   :  { %v756_v41 = vmul.f32 %v754_v40, %v754_v40 }
 0x1fe   :  { %759 = vadd.xlane.f32.xlu1 %v756_v41 }
 0x287   :  { %v758_v54 = vpop.xlane.xlu1 %757 }
 0x288   :  { %v761_v55 = vmul.f32 0.0078125, %v758_v54 }
 0x28a   :  { %v763_v56 = vadd.f32 1e-05, %v761_v55 }
 0x28b   :  { %v760_v57 = vpop.xlane.xlu1 %759 }
 0x28c   :  { %v762_v58 = vmul.f32 0.0078125, %v760_v57  ;;  %1363 = vrsqrt.f32 %v763_v56 }
 0x28e   :  { %v764_v59 = vadd.f32 1e-05, %v762_v58 }
 0x290   :  { %1365 = vrsqrt.f32 %v764_v59 }
 0x296   :  { %v1364_v60 = vpop.eup %1363 }
 0x297   :  { %v767_v62 = vmul.f32 %v1364_v60, %v753_v35 }
 0x29a   :  { %v1366_v61 = vpop.eup %1365 }
 0x29b   :  { %v768_v63 = vmul.f32 %v1366_v61, %v754_v40 }
 0x29d   :  { %v769_v0 = vpack.c.bf16 %v768_v63, %v767_v62 }
 0x29f   :  { %1247 = vmatmul.mubr.bf16.vlgmr.msra.gmra.mrb[8].mxu0 %v769_v0 }
 0x372   :  { %v875_v4 = vpop.f32.mrb[8].mxu0 }
 0x373   :  { %v876_v5 = vadd.f32 %v1090_v3, %v875_v4  ;;  %v1248_v6 = vpop.f32.mrb[9].mxu0 }
 0x374   :  { %v878_v7 = vpop.f32.mrb[10].mxu0 }
 0x375   :  { %v879_v8 = vadd.f32 %v1090_v3, %v878_v7  ;;  %v1249_v9 = vpop.f32.mrb[11].mxu0  ;;  %v882_v10 = vmax.f32 %v876_v5, 0.0 }
 0x377   :  { %v883_v11 = vmax.f32 %v879_v8, 0.0 }
 0x379   :  { %v884_v12 = vpack.c.bf16 %v883_v11, %v882_v10 }
 0x37b   :  { %1267 = vmatmul.mubr.bf16.vlgmr.msra.gmra.mrb[8].mxu1 %v884_v12 }
 0x44e   :  { %v990_v13 = vpop.f32.mrb[8].mxu1 }
 0x44f   :  { %v1268_v14 = vpop.f32.mrb[9].mxu1  ;;  %v991_v16 = vadd.f32 %v1099_v38, %v990_v13 }
 0x450   :  { %v993_v15 = vpop.f32.mrb[10].mxu1 }
 0x451   :  { %v994_v17 = vadd.f32 %v1099_v38, %v993_v15  ;;  %v1269_v18 = vpop.f32.mrb[11].mxu1 }
 0x453   :  { %v1115_v19 = vpack.c.bf16 %v994_v17, %v991_v16 }
 0x455   :  { %1116 = vst [vmem:[#allocation10] sm:$0xff] %v1115_v19  }
 0x456   :  { %1466 = shalt.err (!%p1463_p8)
}
 0x457   :  { %s1467_s14 = scalar_lea.hbm %s1661_s7, 128 }
 0x458   :  { %p1468_p9 = scmp.ne.s32.totalorder %s1661_s7, %s1467_s14  ;;  %p1471_p10 = scmp.lt.u32.totalorder %s1467_s14, %s1661_s7 }
 0x45a   :  { %p1473_p11 = pnand %p1471_p10, %p1468_p9 }
 0x45c   :  { %1476 = shalt.err (!%p1473_p11)
}
 0x45d   :  { %1018 = dma.vmem_to_hbm [thread:$0]  %s1013_s10, 128, %s1661_s7, [#allocation4], %s1486_s11, %s1486_s11, %s1487_s12  }
 0x45e   :  { %1483 = dma.done.wait [#allocation4], 128  }
 0x45f   :  { %1484 = vsyncadd [#allocation4], 4294967168 }
 0x460   :  { %1022 = vsyncpa [#allocation3], 1 }
 0x461   :  { %1023 = vsyncpa [#allocation6], 1 }
 0x462   :  { %1024 = vsyncpa [#allocation9], 1 }
 0x463   :  { %1025 = vsyncpa [#allocation4], 1 }

// kernel: tpu_custom_call.1
= control target key start
LH: loop header
LB: loop body
LE: loop exit
PB: predicated region body
PF: predicated region fallthrough
CT: control target
= control target key end

     0   :  { %12 = vsyncpa [#allocation3], 0  ;;  %s1654_s0 = inlined_call_operand.hbm [shape: bf16[16,896], index: 0, kind: input, shape index: {}]   ;;  %s1655_s1 = inlined_call_operand.hbm [shape: bf16[896,128], index: 1, kind: input, shape index: {}]   ;;  %s1656_s2 = inlined_call_operand.vmem [shape: f32[1,128], index: 2, kind: input, shape index: {}]   ;;  %s1657_s3 = inlined_call_operand.hbm [shape: bf16[128,128], index: 3, kind: input, shape index: {}]   ;;  %s1658_s4 = inlined_call_operand.vmem [shape: f32[1,128], index: 4, kind: input, shape index: {}]   ;;  %s1659_s5 = inlined_call_operand.hbm [shape: bf16[128,128], index: 5, kind: input, shape index: {}]   ;;  %s1660_s6 = inlined_call_operand.vmem [shape: f32[1,128], index: 6, kind: input, shape index: {}]   ;;  %s1661_s7 = inlined_call_operand.hbm [shape: bf16[16,128], index: 7, kind: output, shape index: {}]  }
   0x1   :  { %13 = vsyncpa [#allocation6], 0 }
   0x2   :  { %14 = vsyncpa [#allocation9], 0 }
   0x3   :  { %15 = vsyncpa [#allocation4], 0  ;;  %s1485_s24 = smov [#allocation5]   ;;  %s1367_s28 = scalar_lea.hbm %s1655_s1, 7168 }
   0x4   :  { %s33_s25 = sshll.u32 %s1485_s24, 4  ;;  %p1368_p0 = scmp.ne.s32.totalorder %s1655_s1, %s1367_s28  ;;  %s34_s25 = int_to_ptr.vmem [resolvable:$true] %s33_s25 }
   0x5   :  { %p1371_p1 = scmp.lt.u32.totalorder %s1367_s28, %s1655_s1 }
   0x7   :  { %p1373_p2 = pnand %p1371_p1, %p1368_p0 }
   0x9   :  { %1376 = shalt.err (!%p1373_p2)
}
   0xa   :  { %s1377_s10 = scalar_lea.vmem %s34_s25, 7168  ;;  %p1382_p4 = scmp.lt.s32.totalorder %s34_s25, %s34_s25 }
   0xb   :  { %p1378_p3 = scmp.ne.s32.totalorder %s34_s25, %s1377_s10  ;;  %p1383_p5 = scmp.lt.s32.totalorder %s1377_s10, %s1377_s10 }
   0xd   :  { %p1384_p6 = por %p1383_p5, %p1382_p4 }
   0xf   :  { %p1385_p7 = pnand %p1384_p6, %p1378_p3 }
  0x11   :  { %1388 = shalt.err (!%p1385_p7)
}
  0x12   :  { %s1486_s11 = smov 64   ;;  %s1487_s12 = smov 4  }
  0x13   :  { %39 = dma.hbm_to_vmem [thread:$0]  %s1655_s1, 7168, %s34_s25, [#allocation6], %s1486_s11, %s1486_s11, %s1487_s12  }
  0x14   :  { %s1488_s15 = smov [#allocation2]   ;;  %s1389_s19 = scalar_lea.hbm %s1654_s0, 896 }
  0x15   :  { %s21_s16 = sshll.u32 %s1488_s15, 4  ;;  %p1390_p8 = scmp.ne.s32.totalorder %s1654_s0, %s1389_s19  ;;  %s22_s16 = int_to_ptr.vmem [resolvable:$true] %s21_s16 }
  0x16   :  { %p1393_p9 = scmp.lt.u32.totalorder %s1389_s19, %s1654_s0 }
  0x18   :  { %p1395_p10 = pnand %p1393_p9, %p1390_p8 }
  0x1a   :  { %1398 = shalt.err (!%p1395_p10)
}
  0x1b   :  { %s1399_s24 = scalar_lea.vmem %s22_s16, 896  ;;  %p1404_p12 = scmp.lt.s32.totalorder %s22_s16, %s22_s16 }
  0x1c   :  { %p1400_p11 = scmp.ne.s32.totalorder %s22_s16, %s1399_s24  ;;  %p1405_p13 = scmp.lt.s32.totalorder %s1399_s24, %s1399_s24 }
  0x1e   :  { %p1406_p0 = por %p1405_p13, %p1404_p12 }
  0x20   :  { %p1407_p1 = pnand %p1406_p0, %p1400_p11 }
  0x22   :  { %1410 = shalt.err (!%p1407_p1)
}
  0x23   :  { %s1489_s1 = smov 448   ;;  %s1490_s25 = smov 28  }
  0x24   :  { %27 = dma.hbm_to_vmem [thread:$0]  %s1654_s0, 896, %s22_s16, [#allocation3], %s1489_s1, %s1489_s1, %s1490_s25  }
  0x25   :  { %s1491_s28 = smov [#allocation7]   ;;  %s1492_s30 = smov [#allocation8]  }
  0x26   :  { %s47_s29 = sshll.u32 %s1491_s28, 4  ;;  %s61_s8 = sshll.u32 %s1492_s30, 4  ;;  %s48_s29 = int_to_ptr.vmem [resolvable:$true] %s47_s29  ;;  %s1563_s8 = int_to_ptr.vmem [resolvable:$true] %s61_s8 }
  0x27   :  { %s1411_s13 = scalar_lea.hbm %s1657_s3, 1024 }
  0x28   :  { %p1412_p2 = scmp.ne.s32.totalorder %s1657_s3, %s1411_s13  ;;  %p1415_p3 = scmp.lt.u32.totalorder %s1411_s13, %s1657_s3 }
  0x2a   :  { %p1417_p4 = pnand %p1415_p3, %p1412_p2 }
  0x2c   :  { %1420 = shalt.err (!%p1417_p4)
}
  0x2d   :  { %s1421_s0 = scalar_lea.vmem %s48_s29, 1024  ;;  %p1426_p6 = scmp.lt.s32.totalorder %s48_s29, %s48_s29 }
  0x2e   :  { %p1422_p5 = scmp.ne.s32.totalorder %s48_s29, %s1421_s0  ;;  %p1427_p7 = scmp.lt.s32.totalorder %s1421_s0, %s1421_s0 }
  0x30   :  { %p1428_p8 = por %p1427_p7, %p1426_p6 }
  0x32   :  { %p1429_p9 = pnand %p1428_p8, %p1422_p5 }
  0x34   :  { %1432 = shalt.err (!%p1429_p9)
}
  0x35   :  { %53 = dma.hbm_to_vmem [thread:$0]  %s1657_s3, 1024, %s48_s29, [#allocation6], %s1486_s11, %s1486_s11, %s1487_s12  }
  0x36   :  { %s1433_s22 = scalar_lea.hbm %s1659_s5, 1024 }
  0x37   :  { %p1434_p10 = scmp.ne.s32.totalorder %s1659_s5, %s1433_s22  ;;  %p1437_p11 = scmp.lt.u32.totalorder %s1433_s22, %s1659_s5 }
  0x39   :  { %p1439_p12 = pnand %p1437_p11, %p1434_p10 }
  0x3b   :  { %1442 = shalt.err (!%p1439_p12)
}
  0x3c   :  { %s1443_s26 = scalar_lea.vmem %s1563_s8, 1024  ;;  %p1448_p0 = scmp.lt.s32.totalorder %s1563_s8, %s1563_s8 }
  0x3d   :  { %p1444_p13 = scmp.ne.s32.totalorder %s1563_s8, %s1443_s26  ;;  %p1449_p1 = scmp.lt.s32.totalorder %s1443_s26, %s1443_s26 }
  0x3f   :  { %p1450_p2 = por %p1449_p1, %p1448_p0 }
  0x41   :  { %p1451_p3 = pnand %p1450_p2, %p1444_p13 }
  0x43   :  { %1454 = shalt.err (!%p1451_p3)
}
  0x44   :  { %67 = dma.hbm_to_vmem [thread:$0]  %s1659_s5, 1024, %s1563_s8, [#allocation9], %s1486_s11, %s1486_s11, %s1487_s12  }
  0x45   :  { %1477 = dma.done.wait [#allocation3], 896  }
  0x46   :  { %1478 = vsyncadd [#allocation3], 4294966400 }
  0x47   :  { %1479 = dma.done.wait [#allocation6], 8192  }
  0x48   :  { %1480 = vsyncadd [#allocation6], 4294959104 }
  0x49   :  { %1481 = dma.done.wait [#allocation9], 1024  }
  0x4a   :  { %1482 = vsyncadd [#allocation9], 4294966272  ;;  %v1281_v0 = vld [vmem:[#allocation5 + $0x40] sm:$0xff]   ;;  %v1285_v4 = vld [vmem:[#allocation5 + $0x48] sm:$0xff]   ;;  %v1493_v38 = vmov 0.0   ;;  %vm1494_vm0 = vmmov 0  }
  0x4b   :  { %v1282_v1 = vld [vmem:[#allocation5] sm:$0xff]   ;;  %1117 = vmatprep.subr.bf16.mxu0 %v1281_v0  ;;  %v1286_v5 = vld [vmem:[#allocation5 + $0x8] sm:$0xff]   ;;  %v1289_v8 = vld [vmem:[#allocation5 + $0x50] sm:$0xff]   ;;  %s1495_s9 = smov [#allocation10]  }
  0x4c   :  { %v1283_v2 = vld [vmem:[#allocation5 + $0xc0] sm:$0xff]   ;;  %1118 = vmatpush3.bf16.msra.mxu0 %v1282_v1  ;;  %v1287_v6 = vld [vmem:[#allocation5 + $0xc8] sm:$0xff]   ;;  %v1290_v9 = vld [vmem:[#allocation5 + $0x10] sm:$0xff]   ;;  %s1012_s10 = sshll.u32 %s1495_s9, 4  ;;  %s1013_s10 = int_to_ptr.vmem [resolvable:$true] %s1012_s10 }
  0x4d   :  { %v1284_v3 = vld [vmem:[#allocation5 + $0x80] sm:$0xff]   ;;  %1139 = vmatprep.subr.bf16.mxu1 %v1283_v2  ;;  %1119 = vmatprep.subr.bf16.mxu0 %v1285_v4  ;;  %v1288_v7 = vld [vmem:[#allocation5 + $0x88] sm:$0xff]   ;;  %v1291_v10 = vld [vmem:[#allocation5 + $0xd0] sm:$0xff]   ;;  %p1460_p5 = scmp.lt.s32.totalorder %s1013_s10, %s1013_s10 }
  0x4e   :  { %1140 = vmatpush3.bf16.msra.mxu1 %v1284_v3  ;;  %v1292_v11 = vld [vmem:[#allocation5 + $0x90] sm:$0xff]   ;;  %v1293_v12 = vld [vmem:[#allocation5 + $0x58] sm:$0xff]   ;;  %v1297_v16 = vld [vmem:[#allocation5 + $0x60] sm:$0xff]  }
  0x4f   :  { %1141 = vmatprep.subr.bf16.mxu1 %v1287_v6  ;;  %v1294_v13 = vld [vmem:[#allocation5 + $0x18] sm:$0xff]   ;;  %v1298_v17 = vld [vmem:[#allocation5 + $0x20] sm:$0xff]   ;;  %v1301_v20 = vld [vmem:[#allocation5 + $0x68] sm:$0xff]  }
  0x50   :  { %1120 = vmatpush3.bf16.msra.mxu0 %v1286_v5  ;;  %v1295_v14 = vld [vmem:[#allocation5 + $0xd8] sm:$0xff]   ;;  %v1299_v18 = vld [vmem:[#allocation5 + $0xe0] sm:$0xff]   ;;  %v1302_v21 = vld [vmem:[#allocation5 + $0x28] sm:$0xff]  }
  0x51   :  { %1121 = vmatprep.subr.bf16.mxu0 %v1289_v8  ;;  %v1296_v15 = vld [vmem:[#allocation5 + $0x98] sm:$0xff]   ;;  %v1300_v19 = vld [vmem:[#allocation5 + $0xa0] sm:$0xff]   ;;  %v1303_v22 = vld [vmem:[#allocation5 + $0xe8] sm:$0xff]  }
  0x52   :  { %1142 = vmatpush3.bf16.msra.mxu1 %v1288_v7  ;;  %v1304_v23 = vld [vmem:[#allocation5 + $0xa8] sm:$0xff]   ;;  %v1305_v24 = vld [vmem:[#allocation5 + $0x70] sm:$0xff]   ;;  %v1309_v28 = vld [vmem:[#allocation5 + $0x78] sm:$0xff]  }
  0x53   :  { %1143 = vmatprep.subr.bf16.mxu1 %v1291_v10  ;;  %v1306_v25 = vld [vmem:[#allocation5 + $0x30] sm:$0xff]   ;;  %v1310_v29 = vld [vmem:[#allocation5 + $0x38] sm:$0xff]   ;;  %v1312_v31 = vld [vmem:[#allocation2] ss:$28 sps:$4 sm:$0xff]  }
  0x54   :  { %1122 = vmatpush3.bf16.msra.mxu0 %v1290_v9  ;;  %v1307_v26 = vld [vmem:[#allocation5 + $0xf0] sm:$0xff]   ;;  %v1311_v30 = vld [vmem:[#allocation5 + $0xf8] sm:$0xff]   ;;  %v1314_v32 = vld [vmem:[#allocation2 + $0x4] ss:$28 sps:$4 sm:$0xff]  }
  0x55   :  { %1123 = vmatprep.subr.bf16.mxu0 %v1293_v12  ;;  %v1308_v27 = vld [vmem:[#allocation5 + $0xb0] sm:$0xff]   ;;  %v1315_v33 = vld [vmem:[#allocation5 + $0xb8] sm:$0xff]   ;;  %614 = vmatprep.mubr.bf16.mxu0 %v1314_v32  ;;  %v1316_v34 = vld [vmem:[#allocation5 + $0x140] sm:$0xff]  }
  0x56   :  { %1144 = vmatpush3.bf16.msra.mxu1 %v1292_v11  ;;  %v1317_v35 = vld [vmem:[#allocation2 + $0x8] ss:$28 sps:$4 sm:$0xff]   ;;  %v1320_v37 = vld [vmem:[#allocation5 + $0x100] sm:$0xff]   ;;  %v1328_v46 = vld [vmem:[#allocation5 + $0x158] sm:$0xff]  }
  0x57   :  { %1145 = vmatprep.subr.bf16.mxu1 %v1295_v14  ;;  %v1319_v36 = vld [vmem:[#allocation2 + $0xc] ss:$28 sps:$4 sm:$0xff]   ;;  %v1321_v39 = vld [vmem:[#allocation5 + $0x180] sm:$0xff]   ;;  %v1322_v40 = vld [vmem:[#allocation5 + $0x148] sm:$0xff]  }
  0x58   :  { %1124 = vmatpush3.bf16.msra.mxu0 %v1294_v13  ;;  %655 = vmatprep.mubr.bf16.mxu1 %v1319_v36  ;;  %v1323_v41 = vld [vmem:[#allocation5 + $0x108] sm:$0xff]   ;;  %v1325_v43 = vld [vmem:[#allocation5 + $0x150] sm:$0xff]   ;;  %v1329_v47 = vld [vmem:[#allocation5 + $0x118] sm:$0xff]  }
  0x59   :  { %1125 = vmatprep.subr.bf16.mxu0 %v1297_v16  ;;  %v1324_v42 = vld [vmem:[#allocation5 + $0x188] sm:$0xff]   ;;  %v1326_v44 = vld [vmem:[#allocation5 + $0x110] sm:$0xff]   ;;  %v1330_v48 = vld [vmem:[#allocation5 + $0x198] sm:$0xff]  }
  0x5a   :  { %1146 = vmatpush3.bf16.msra.mxu1 %v1296_v15  ;;  %v1327_v45 = vld [vmem:[#allocation5 + $0x190] sm:$0xff]   ;;  %v1331_v49 = vld [vmem:[#allocation5 + $0x160] sm:$0xff]   ;;  %v1334_v52 = vld [vmem:[#allocation5 + $0x168] sm:$0xff]  }
  0x5b   :  { %1147 = vmatprep.subr.bf16.mxu1 %v1299_v18  ;;  %v1332_v50 = vld [vmem:[#allocation5 + $0x120] sm:$0xff]   ;;  %v1335_v53 = vld [vmem:[#allocation5 + $0x128] sm:$0xff]   ;;  %v1337_v55 = vld [vmem:[#allocation5 + $0x170] sm:$0xff]  }
  0x5c   :  { %1126 = vmatpush3.bf16.msra.mxu0 %v1298_v17  ;;  %v1333_v51 = vld [vmem:[#allocation5 + $0x1a0] sm:$0xff]   ;;  %v1336_v54 = vld [vmem:[#allocation5 + $0x1a8] sm:$0xff]   ;;  %v1338_v56 = vld [vmem:[#allocation5 + $0x130] sm:$0xff]  }
  0x5d   :  { %1127 = vmatprep.subr.bf16.mxu0 %v1301_v20  ;;  %v1339_v57 = vld [vmem:[#allocation5 + $0x1b0] sm:$0xff]   ;;  %v1344_v58 = vld [vmem:[#allocation2 + $0x14] ss:$28 sps:$4 sm:$0xff]   ;;  %v1026_v1 = vld [vmem:[%s1656_s2] ss:$0 sm:$0xff] }
  0x5e   :  { %1148 = vmatpush3.bf16.msra.mxu1 %v1300_v19  ;;  %v1340_v59 = vld [vmem:[#allocation5 + $0x178] sm:$0xff]   ;;  %v1348_v32 = vld [vmem:[#allocation7 + $0x8] sm:$0xff]  }
  0x5f   :  { %1149 = vmatprep.subr.bf16.mxu1 %v1303_v22  ;;  %v1341_v60 = vld [vmem:[#allocation5 + $0x138] sm:$0xff]  }
  0x60   :  { %1128 = vmatpush3.bf16.msra.mxu0 %v1302_v21  ;;  %v1345_v61 = vld [vmem:[#allocation5 + $0x1b8] sm:$0xff]  }
  0x61   :  { %1129 = vmatprep.subr.bf16.mxu0 %v1305_v24  ;;  %v1342_v62 = vld [vmem:[#allocation2 + $0x10] ss:$28 sps:$4 sm:$0xff]   ;;  %v1346_v63 = vld [vmem:[#allocation2 + $0x18] ss:$28 sps:$4 sm:$0xff]  }
  0x62   :  { %1150 = vmatpush3.bf16.msra.mxu1 %v1304_v23 }
  0x63   :  { %1151 = vmatprep.subr.bf16.mxu1 %v1307_v26 }
  0x64   :  { %1130 = vmatpush3.bf16.msra.mxu0 %v1306_v25 }
  0x65   :  { %1131 = vmatprep.subr.bf16.mxu0 %v1309_v28 }
  0x66   :  { %1152 = vmatpush3.bf16.msra.mxu1 %v1308_v27 }
  0x67   :  { %1153 = vmatprep.subr.bf16.mxu1 %v1311_v30 }
  0x68   :  { %1132 = vmatpush3.bf16.msra.mxu0 %v1310_v29 }
  0x69   :  { %1161 = vmatprep.subr.bf16.mxu0 %v1316_v34 }
  0x6a   :  { %1154 = vmatpush3.bf16.msra.mxu1 %v1315_v33 }
  0x6b   :  { %615 = vmatmul.mubr.bf16.vlgmr.msra.gmra.mrb[0].mxu0 %v1312_v31  ;;  %1210 = vmatprep.subr.bf16.mxu1 %v1493_v38  ;;  %v1347_v31 = vld [vmem:[#allocation7] sm:$0xff]  }
  0x6c   :  { %1162 = vmatpush3.bf16.msra.mxu0 %v1320_v37  ;;  %696 = vmatprep.mubr.bf16.mxu0 %v1344_v58 }
  0x6d   :  { %656 = vmatmul.mubr.bf16.vlgmr.msra.gmra.mrb[0].mxu1 %v1317_v35  ;;  %1163 = vmatprep.subr.bf16.mxu0 %v1322_v40 }
  0x6e   :  { %1211 = vmatpush3.bf16.msra.mxu1 %v1321_v39  ;;  %1226 = vmatprep.mubr.msk.bf16.mxu1 %vm1494_vm0, %v1493_v38 }
  0x6f   :  { %1212 = vmatprep.subr.bf16.mxu1 %v1493_v38 }
  0x70   :  { %1164 = vmatpush3.bf16.msra.mxu0 %v1323_v41 }
  0x71   :  { %1165 = vmatprep.subr.bf16.mxu0 %v1325_v43  ;;  %v1350_v43 = vld [vmem:[#allocation7 + $0x18] sm:$0xff]  }
  0x72   :  { %1213 = vmatpush3.bf16.msra.mxu1 %v1324_v42  ;;  %v1349_v42 = vld [vmem:[#allocation7 + $0x10] sm:$0xff]  }
  0x73   :  { %1214 = vmatprep.subr.bf16.mxu1 %v1493_v38 }
  0x74   :  { %1166 = vmatpush3.bf16.msra.mxu0 %v1326_v44  ;;  %v1351_v44 = vld [vmem:[#allocation7 + $0x20] sm:$0xff]  }
  0x75   :  { %1167 = vmatprep.subr.bf16.mxu0 %v1328_v46  ;;  %v1353_v46 = vld [vmem:[#allocation7 + $0x30] sm:$0xff]  }
  0x76   :  { %1215 = vmatpush3.bf16.msra.mxu1 %v1327_v45  ;;  %v1352_v45 = vld [vmem:[#allocation7 + $0x28] sm:$0xff]  }
  0x77   :  { %1216 = vmatprep.subr.bf16.mxu1 %v1493_v38 }
  0x78   :  { %1168 = vmatpush3.bf16.msra.mxu0 %v1329_v47  ;;  %v1354_v47 = vld [vmem:[#allocation7 + $0x38] sm:$0xff]  }
  0x79   :  { %1169 = vmatprep.subr.bf16.mxu0 %v1331_v49  ;;  %v1356_v49 = vld [vmem:[#allocation8 + $0x8] sm:$0xff]  }
  0x7a   :  { %1217 = vmatpush3.bf16.msra.mxu1 %v1330_v48  ;;  %v1355_v48 = vld [vmem:[#allocation8] sm:$0xff]  }
  0x7b   :  { %1218 = vmatprep.subr.bf16.mxu1 %v1493_v38 }
  0x7c   :  { %1170 = vmatpush3.bf16.msra.mxu0 %v1332_v50  ;;  %v1357_v50 = vld [vmem:[#allocation8 + $0x10] sm:$0xff]  }
  0x7d   :  { %1171 = vmatprep.subr.bf16.mxu0 %v1334_v52  ;;  %v1359_v52 = vld [vmem:[#allocation8 + $0x20] sm:$0xff]  }
  0x7e   :  { %1219 = vmatpush3.bf16.msra.mxu1 %v1333_v51  ;;  %v1358_v51 = vld [vmem:[#allocation8 + $0x18] sm:$0xff]  }
  0x7f   :  { %1220 = vmatprep.subr.bf16.mxu1 %v1493_v38 }
  0x80   :  { %1172 = vmatpush3.bf16.msra.mxu0 %v1335_v53  ;;  %v1360_v53 = vld [vmem:[#allocation8 + $0x28] sm:$0xff]  }
  0x81   :  { %1173 = vmatprep.subr.bf16.mxu0 %v1337_v55 }
  0x82   :  { %1221 = vmatpush3.bf16.msra.mxu1 %v1336_v54 }
  0x83   :  { %1222 = vmatprep.subr.bf16.mxu1 %v1493_v38 }
  0x84   :  { %1174 = vmatpush3.bf16.msra.mxu0 %v1338_v56 }
  0x85   :  { %1175 = vmatprep.subr.bf16.mxu0 %v1340_v59 }
  0x86   :  { %1223 = vmatpush3.bf16.msra.mxu1 %v1339_v57 }
  0x87   :  { %1224 = vmatprep.subr.bf16.mxu1 %v1493_v38 }
  0x88   :  { %1176 = vmatpush3.bf16.msra.mxu0 %v1341_v60 }
  0x89   :  { %1230 = vmatprep.subr.bf16.mxu0 %v1493_v38 }
  0x8a   :  { %1225 = vmatpush3.bf16.msra.mxu1 %v1345_v61 }
  0x8b   :  { %1250 = vmatprep.subr.bf16.mxu1 %v1493_v38  ;;  %697 = vmatmul.mubr.bf16.vlgmr.msra.gmra.mrb[4].mxu0 %v1342_v62 }
  0x8c   :  { %1246 = vmatprep.mubr.msk.bf16.mxu0 %vm1494_vm0, %v1493_v38  ;;  %1231 = vmatpush3.bf16.msra.mxu0 %v1347_v31 }
  0x8d   :  { %1227 = vmatmul.mubr.bf16.vlgmr.msra.gmra.mrb[4].mxu1 %v1346_v63  ;;  %1232 = vmatprep.subr.bf16.mxu0 %v1493_v38 }
  0x8e   :  { %1266 = vmatprep.mubr.msk.bf16.mxu1 %vm1494_vm0, %v1493_v38  ;;  %1251 = vmatpush3.bf16.msra.mxu1 %v1355_v48 }
  0x8f   :  { %1252 = vmatprep.subr.bf16.mxu1 %v1493_v38 }
  0x90   :  { %1233 = vmatpush3.bf16.msra.mxu0 %v1348_v32 }
  0x91   :  { %1234 = vmatprep.subr.bf16.mxu0 %v1493_v38 }
  0x92   :  { %1253 = vmatpush3.bf16.msra.mxu1 %v1356_v49 }
  0x93   :  { %1254 = vmatprep.subr.bf16.mxu1 %v1493_v38 }
  0x94   :  { %1235 = vmatpush3.bf16.msra.mxu0 %v1349_v42 }
  0x95   :  { %1236 = vmatprep.subr.bf16.mxu0 %v1493_v38 }
  0x96   :  { %1255 = vmatpush3.bf16.msra.mxu1 %v1357_v50 }
  0x97   :  { %1256 = vmatprep.subr.bf16.mxu1 %v1493_v38 }
  0x98   :  { %1237 = vmatpush3.bf16.msra.mxu0 %v1350_v43 }
  0x99   :  { %1238 = vmatprep.subr.bf16.mxu0 %v1493_v38 }
  0x9a   :  { %1257 = vmatpush3.bf16.msra.mxu1 %v1358_v51 }
  0x9b   :  { %1258 = vmatprep.subr.bf16.mxu1 %v1493_v38 }
  0x9c   :  { %1239 = vmatpush3.bf16.msra.mxu0 %v1351_v44 }
  0x9d   :  { %1240 = vmatprep.subr.bf16.mxu0 %v1493_v38 }
  0x9e   :  { %1259 = vmatpush3.bf16.msra.mxu1 %v1359_v52 }
  0x9f   :  { %1260 = vmatprep.subr.bf16.mxu1 %v1493_v38 }
  0xa0   :  { %1241 = vmatpush3.bf16.msra.mxu0 %v1352_v45 }
  0xa1   :  { %1242 = vmatprep.subr.bf16.mxu0 %v1493_v38 }
  0xa2   :  { %1261 = vmatpush3.bf16.msra.mxu1 %v1360_v53 }
  0xa3   :  { %1262 = vmatprep.subr.bf16.mxu1 %v1493_v38 }
  0xa4   :  { %1243 = vmatpush3.bf16.msra.mxu0 %v1353_v46 }
  0xa5   :  { %1244 = vmatprep.subr.bf16.mxu0 %v1493_v38 }
  0xa8   :  { %1245 = vmatpush3.bf16.msra.mxu0 %v1354_v47 }
 0x13e   :  { %v1133_v0 = vpop.f32.mrb[0].mxu0 }
 0x13f   :  { %v1134_v2 = vpop.f32.mrb[1].mxu0 }
 0x140   :  { %v1135_v3 = vadd.f32 %v1134_v2, %v1133_v0  ;;  %v1136_v4 = vpop.f32.mrb[2].mxu0  ;;  %v1155_v5 = vpop.f32.mrb[0].mxu1  ;;  %v1362_v2 = vld [vmem:[#allocation8 + $0x38] sm:$0xff]  }
 0x141   :  { %v1137_v6 = vpop.f32.mrb[3].mxu0  ;;  %v1156_v9 = vpop.f32.mrb[1].mxu1 }
 0x142   :  { %v617_v7 = vadd.f32 %v1135_v3, %v1026_v1  ;;  %v1138_v8 = vadd.f32 %v1137_v6, %v1136_v4  ;;  %v1157_v10 = vadd.f32 %v1156_v9, %v1155_v5  ;;  %v1158_v11 = vpop.f32.mrb[2].mxu1  ;;  %v1090_v3 = vld [vmem:[%s1658_s4] ss:$0 sm:$0xff]  ;;  %s1455_s4 = scalar_lea.vmem %s1013_s10, 128 }
 0x143   :  { %v1159_v13 = vpop.f32.mrb[3].mxu1  ;;  %p1456_p4 = scmp.ne.s32.totalorder %s1013_s10, %s1455_s4  ;;  %p1461_p6 = scmp.lt.s32.totalorder %s1455_s4, %s1455_s4 }
 0x144   :  { %v620_v12 = vadd.f32 %v1138_v8, %v1026_v1  ;;  %v658_v14 = vadd.f32 %v1157_v10, %v617_v7  ;;  %v1160_v15 = vadd.f32 %v1159_v13, %v1158_v11  ;;  %v1361_v1 = vld [vmem:[#allocation8 + $0x30] sm:$0xff]  }
 0x145   :  { %1263 = vmatpush3.bf16.msra.mxu1 %v1361_v1  ;;  %p1462_p7 = por %p1461_p6, %p1460_p5 }
 0x146   :  { %v661_v16 = vadd.f32 %v1160_v15, %v620_v12  ;;  %1264 = vmatprep.subr.bf16.mxu1 %v1493_v38  ;;  %v1099_v38 = vld [vmem:[%s1660_s6] ss:$0 sm:$0xff] }
 0x147   :  { %p1463_p8 = pnand %p1462_p7, %p1456_p4 }
 0x149   :  { %1265 = vmatpush3.bf16.msra.mxu1 %v1362_v2 }
 0x15e   :  { %v1177_v17 = vpop.f32.mrb[4].mxu0 }
 0x15f   :  { %v1178_v18 = vpop.f32.mrb[5].mxu0 }
 0x160   :  { %v739_v19 = vpop.f32.mrb[4].mxu1  ;;  %v1179_v20 = vadd.f32 %v1178_v18, %v1177_v17  ;;  %v1180_v21 = vpop.f32.mrb[6].mxu0 }
 0x161   :  { %v1228_v22 = vpop.f32.mrb[5].mxu1  ;;  %v1181_v23 = vpop.f32.mrb[7].mxu0 }
 0x162   :  { %v742_v24 = vpop.f32.mrb[6].mxu1  ;;  %v699_v25 = vadd.f32 %v1179_v20, %v658_v14  ;;  %v1182_v26 = vadd.f32 %v1181_v23, %v1180_v21 }
 0x163   :  { %v1229_v27 = vpop.f32.mrb[7].mxu1 }
 0x164   :  { %v740_v28 = vadd.f32 %v739_v19, %v699_v25  ;;  %v702_v29 = vadd.f32 %v1182_v26, %v661_v16 }
 0x166   :  { %v743_v30 = vadd.f32 %v742_v24, %v702_v29  ;;  %746 = vadd.xlane.f32.xlu0 %v740_v28 }
 0x16a   :  { %748 = vadd.xlane.f32.xlu0 %v743_v30 }
 0x1f3   :  { %v747_v33 = vpop.xlane.xlu0 %746 }
 0x1f4   :  { %v751_v34 = vmul.f32 0.0078125, %v747_v33 }
 0x1f6   :  { %v753_v35 = vsub.f32 %v740_v28, %v751_v34 }
 0x1f7   :  { %v749_v36 = vpop.xlane.xlu0 %748 }
 0x1f8   :  { %v752_v37 = vmul.f32 0.0078125, %v749_v36  ;;  %v755_v39 = vmul.f32 %v753_v35, %v753_v35 }
 0x1fa   :  { %v754_v40 = vsub.f32 %v743_v30, %v752_v37  ;;  %757 = vadd.xlane.f32.xlu1 %v755_v39 }
 0x1fc   :  { %v756_v41 = vmul.f32 %v754_v40, %v754_v40 }
 0x1fe   :  { %759 = vadd.xlane.f32.xlu1 %v756_v41 }
 0x287   :  { %v758_v54 = vpop.xlane.xlu1 %757 }
 0x288   :  { %v761_v55 = vmul.f32 0.0078125, %v758_v54 }
 0x28a   :  { %v763_v56 = vadd.f32 1e-05, %v761_v55 }
 0x28b   :  { %v760_v57 = vpop.xlane.xlu1 %759 }
 0x28c   :  { %v762_v58 = vmul.f32 0.0078125, %v760_v57  ;;  %1363 = vrsqrt.f32 %v763_v56 }
 0x28e   :  { %v764_v59 = vadd.f32 1e-05, %v762_v58 }
 0x290   :  { %1365 = vrsqrt.f32 %v764_v59 }
 0x296   :  { %v1364_v60 = vpop.eup %1363 }
 0x297   :  { %v767_v62 = vmul.f32 %v1364_v60, %v753_v35 }
 0x29a   :  { %v1366_v61 = vpop.eup %1365 }
 0x29b   :  { %v768_v63 = vmul.f32 %v1366_v61, %v754_v40 }
 0x29d   :  { %v769_v0 = vpack.c.bf16 %v768_v63, %v767_v62 }
 0x29f   :  { %1247 = vmatmul.mubr.bf16.vlgmr.msra.gmra.mrb[8].mxu0 %v769_v0 }
 0x372   :  { %v875_v4 = vpop.f32.mrb[8].mxu0 }
 0x373   :  { %v876_v5 = vadd.f32 %v1090_v3, %v875_v4  ;;  %v1248_v6 = vpop.f32.mrb[9].mxu0 }
 0x374   :  { %v878_v7 = vpop.f32.mrb[10].mxu0 }
 0x375   :  { %v879_v8 = vadd.f32 %v1090_v3, %v878_v7  ;;  %v1249_v9 = vpop.f32.mrb[11].mxu0  ;;  %v882_v10 = vmax.f32 %v876_v5, 0.0 }
 0x377   :  { %v883_v11 = vmax.f32 %v879_v8, 0.0 }
 0x379   :  { %v884_v12 = vpack.c.bf16 %v883_v11, %v882_v10 }
 0x37b   :  { %1267 = vmatmul.mubr.bf16.vlgmr.msra.gmra.mrb[8].mxu1 %v884_v12 }
 0x44e   :  { %v990_v13 = vpop.f32.mrb[8].mxu1 }
 0x44f   :  { %v1268_v14 = vpop.f32.mrb[9].mxu1  ;;  %v991_v16 = vadd.f32 %v1099_v38, %v990_v13 }
 0x450   :  { %v993_v15 = vpop.f32.mrb[10].mxu1 }
 0x451   :  { %v994_v17 = vadd.f32 %v1099_v38, %v993_v15  ;;  %v1269_v18 = vpop.f32.mrb[11].mxu1 }
 0x453   :  { %v1115_v19 = vpack.c.bf16 %v994_v17, %v991_v16 }
 0x455   :  { %1116 = vst [vmem:[#allocation10] sm:$0xff] %v1115_v19  }
 0x456   :  { %1466 = shalt.err (!%p1463_p8)
}
 0x457   :  { %s1467_s14 = scalar_lea.hbm %s1661_s7, 128 }
 0x458   :  { %p1468_p9 = scmp.ne.s32.totalorder %s1661_s7, %s1467_s14  ;;  %p1471_p10 = scmp.lt.u32.totalorder %s1467_s14, %s1661_s7 }
 0x45a   :  { %p1473_p11 = pnand %p1471_p10, %p1468_p9 }
 0x45c   :  { %1476 = shalt.err (!%p1473_p11)
}
 0x45d   :  { %1018 = dma.vmem_to_hbm [thread:$0]  %s1013_s10, 128, %s1661_s7, [#allocation4], %s1486_s11, %s1486_s11, %s1487_s12  }
 0x45e   :  { %1483 = dma.done.wait [#allocation4], 128  }
 0x45f   :  { %1484 = vsyncadd [#allocation4], 4294967168 }
 0x460   :  { %1022 = vsyncpa [#allocation3], 1 }
 0x461   :  { %1023 = vsyncpa [#allocation6], 1 }
 0x462   :  { %1024 = vsyncpa [#allocation9], 1 }
 0x463   :  { %1025 = vsyncpa [#allocation4], 1 }

</bundles_post_ra>
